<compile_context>
chip_gen: v7x
topology: tpu7x:2x2x1
jax: 0.10.0
libtpu: 0.0.40
codegen_flags: <defaults>
</compile_context>

<pallas_src>
import functools
import math

import jax
import jax.numpy as jnp
from jax import lax
from jax.experimental import pallas as pl
from jax.experimental.pallas import tpu as pltpu


def _round_up(x, m):
    return (x + m - 1) // m * m


def _choose_block(dim, unit, cap):
    """Pick a block size for `dim`.

    Prefers (a) the full dim (always a legal TPU block), then (b) a
    unit-multiple divisor of dim, then (c) padding as a last resort.
    Returns (block, padded_dim).
    """
    if dim <= cap:
        return dim, dim
    b = (cap // unit) * unit
    while b >= unit:
        if dim % b == 0:
            return b, dim
        b -= unit
    b = (cap // unit) * unit
    return b, _round_up(dim, b)


# ---------------------------------------------------------------------------
# Exact GELU (erf via Abramowitz & Stegun 7.1.26, max abs err ~1.5e-7) so the
# epilogue can be fused in-kernel without relying on an erf lowering.
# ---------------------------------------------------------------------------
def _erf_approx(x):
    a1, a2, a3, a4, a5 = (0.254829592, -0.284496736, 1.421413741,
                          -1.453152027, 1.061405429)
    p = 0.3275911
    ax = jnp.abs(x)
    t = 1.0 / (1.0 + p * ax)
    poly = ((((a5 * t + a4) * t + a3) * t + a2) * t + a1) * t
    y = 1.0 - poly * jnp.exp(-ax * ax)
    return jnp.where(x >= 0, y, -y)


def _gelu_exact(x):
    return 0.5 * x * (1.0 + _erf_approx(x * 0.7071067811865476))


# ---------------------------------------------------------------------------
# Tiled linear:  y = x @ W_t + b  (+ optional fused GELU / residual epilogue).
# W_t is pre-transposed to (K, N) and pre-cast to bf16 at param-prep time.
# ---------------------------------------------------------------------------
def _linear_kernel(*refs, activation, has_residual):
    if has_residual:
        x_ref, w_ref, b_ref, r_ref, o_ref, acc_ref = refs
    else:
        x_ref, w_ref, b_ref, o_ref, acc_ref = refs
        r_ref = None

    @pl.when(pl.program_id(2) == 0)
    def _():
        acc_ref[...] = jnp.zeros_like(acc_ref)

    acc_ref[...] += jnp.dot(x_ref[...].astype(jnp.bfloat16), w_ref[...],
                            preferred_element_type=jnp.float32)

    @pl.when(pl.program_id(2) == pl.num_programs(2) - 1)
    def _():
        y = acc_ref[...] + b_ref[...]
        if activation == "gelu":
            y = _gelu_exact(y)
        if r_ref is not None:
            y = y + r_ref[...]
        o_ref[...] = y.astype(o_ref.dtype)


def linear(x, w_t, b_row, *, residual=None, activation=None):
    """x: (M, K) f32;  w_t: (K, C) bf16;  b_row: (1, C) f32  ->  (M, C) f32."""
    M, K = x.shape
    C = w_t.shape[1]
    tm, Mp = _choose_block(M, 8, 512)
    tn, Np = _choose_block(C, 128, 512)
    tk, Kp = _choose_block(K, 128, 1024)

    if (Mp, Kp) != (M, K):
        x = jnp.pad(x, ((0, Mp - M), (0, Kp - K)))
    if (Kp, Np) != (K, C):
        w_t = jnp.pad(w_t, ((0, Kp - K), (0, Np - C)))
    if Np != C:
        b_row = jnp.pad(b_row, ((0, 0), (0, Np - C)))
    res = residual
    if res is not None and (Mp, Np) != (M, C):
        res = jnp.pad(res, ((0, Mp - M), (0, Np - C)))

    in_specs = [
        pl.BlockSpec((tm, tk), lambda i, j, k: (i, k)),
        pl.BlockSpec((tk, tn), lambda i, j, k: (k, j)),
        pl.BlockSpec((1, tn), lambda i, j, k: (0, j)),
    ]
    args = [x, w_t, b_row]
    if res is not None:
        in_specs.append(pl.BlockSpec((tm, tn), lambda i, j, k: (i, j)))
        args.append(res)

    out = pl.pallas_call(
        functools.partial(_linear_kernel, activation=activation,
                          has_residual=res is not None),
        out_shape=jax.ShapeDtypeStruct((Mp, Np), jnp.float32),
        grid_spec=pltpu.PrefetchScalarGridSpec(
            num_scalar_prefetch=0,
            grid=(Mp // tm, Np // tn, Kp // tk),
            in_specs=in_specs,
            out_specs=pl.BlockSpec((tm, tn), lambda i, j, k: (i, j)),
            scratch_shapes=[pltpu.VMEM((tm, tn), jnp.float32)],
        ),
        compiler_params=pltpu.CompilerParams(
            dimension_semantics=("parallel", "parallel", "arbitrary")),
    )(*args)
    if (Mp, Np) != (M, C):
        out = out[:M, :C]
    return out


# ---------------------------------------------------------------------------
# LayerNorm over the last dim, rows tiled on the grid (f32 statistics).
# ---------------------------------------------------------------------------
def _layernorm_kernel(x_ref, g_ref, b_ref, o_ref, *, eps):
    x = x_ref[...].astype(jnp.float32)
    mean = jnp.mean(x, axis=-1, keepdims=True)
    xc = x - mean
    var = jnp.mean(xc * xc, axis=-1, keepdims=True)
    inv = lax.rsqrt(var + eps)
    o_ref[...] = (xc * inv * g_ref[...] + b_ref[...]).astype(o_ref.dtype)


def layer_norm(x, gamma_row, beta_row, *, eps=1e-5):
    M, D = x.shape
    tm, Mp = _choose_block(M, 8, 1024)
    if Mp != M:
        x = jnp.pad(x, ((0, Mp - M), (0, 0)))
    out = pl.pallas_call(
        functools.partial(_layernorm_kernel, eps=eps),
        out_shape=jax.ShapeDtypeStruct((Mp, D), jnp.float32),
        grid=(Mp // tm,),
        in_specs=[
            pl.BlockSpec((tm, D), lambda i: (i, 0)),
            pl.BlockSpec((1, D), lambda i: (0, 0)),
            pl.BlockSpec((1, D), lambda i: (0, 0)),
        ],
        out_specs=pl.BlockSpec((tm, D), lambda i: (i, 0)),
        compiler_params=pltpu.CompilerParams(dimension_semantics=("parallel",)),
    )(x, gamma_row, beta_row)
    return out[:M] if Mp != M else out


# ---------------------------------------------------------------------------
# Fused MultiScaleConv1d: conv3 + conv5 + BatchNorm(eval) + concat in ONE pass.
# Weights are combined tap-major (5, Cin, 2*Cout) at param-prep time so the
# kernel is 5 shifted MXU matmuls writing the (S, 2D) key_local tile directly.
# ---------------------------------------------------------------------------
def _conv_kernel(x_ref, w_ref, b_ref, o_ref, *, ksize, seq_len):
    x = x_ref[0].astype(jnp.bfloat16)                       # (S + 4, Cin)
    acc = jnp.zeros((seq_len, o_ref.shape[-1]), jnp.float32)
    for dt in range(ksize):                                 # static, unrolled
        acc += jnp.dot(x[dt:dt + seq_len, :], w_ref[dt],
                       preferred_element_type=jnp.float32)
    o_ref[0] = (acc + b_ref[...]).astype(o_ref.dtype)


def multiscale_conv(x, w_taps, b_row):
    """x: (B, S, Cin);  w_taps: (5, Cin, 2*Cout) bf16;  b_row: (1, 2*Cout)."""
    B, S, Cin = x.shape
    k, _, Cout2 = w_taps.shape
    pad = (k - 1) // 2
    xp = jnp.pad(x, ((0, 0), (pad, pad), (0, 0)))
    Sp = S + 2 * pad
    return pl.pallas_call(
        functools.partial(_conv_kernel, ksize=k, seq_len=S),
        out_shape=jax.ShapeDtypeStruct((B, S, Cout2), jnp.float32),
        grid=(B,),
        in_specs=[
            pl.BlockSpec((1, Sp, Cin), lambda bi: (bi, 0, 0)),
            pl.BlockSpec((k, Cin, Cout2), lambda bi: (0, 0, 0)),
            pl.BlockSpec((1, Cout2), lambda bi: (0, 0)),
        ],
        out_specs=pl.BlockSpec((1, S, Cout2), lambda bi: (bi, 0, 0)),
        compiler_params=pltpu.CompilerParams(dimension_semantics=("parallel",)),
    )(xp, w_taps, b_row)


# ---------------------------------------------------------------------------
# Dual (local + global) attention, no head transposes: per-batch (S, D) tiles,
# heads are static column slices, output written as one lane-dense (S, D) slab
# in the exact column layout w_o consumes.
# ---------------------------------------------------------------------------
def _softmax_rows(s):
    s = s - jnp.max(s, axis=-1, keepdims=True)
    e = jnp.exp(s)
    return e * pl.reciprocal(jnp.sum(e, axis=-1, keepdims=True), approx=True)


def _attn_kernel(qgv_ref, kl_ref, o_ref, *, n_head, d_k, scale):
    D = n_head * d_k
    qgv = qgv_ref[0]                                        # (S, 3D) f32
    q = (qgv[:, :D] * scale).astype(jnp.bfloat16)           # scale folded once
    kg = qgv[:, D:2 * D].astype(jnp.bfloat16)
    v = qgv[:, 2 * D:].astype(jnp.bfloat16)
    kl = kl_ref[0].astype(jnp.bfloat16)
    dn = (((1,), (1,)), ((), ()))                           # q @ k^T, no transpose

    # TODO(synk): for long sequences (S >~ 1024) this should be KV-chunked with
    # an online softmax (flash-style) to bound VMEM; whole-S tiles are fine here.
    outs = []
    for h in range(n_head):                                 # static unroll
        cs = slice(h * d_k, (h + 1) * d_k)
        s_l = lax.dot_general(q[:, cs], kl[:, cs], dn,
                              preferred_element_type=jnp.float32)
        s_g = lax.dot_general(q[:, cs], kg[:, cs], dn,
                              preferred_element_type=jnp.float32)
        # attn_local @ v + attn_global @ v == (softmax_l + softmax_g) @ v
        a = (_softmax_rows(s_l) + _softmax_rows(s_g)).astype(jnp.bfloat16)
        outs.append(jnp.dot(a, v[:, cs], preferred_element_type=jnp.float32))
    o_ref[0] = jnp.concatenate(outs, axis=-1).astype(o_ref.dtype)


def dual_attention(qgv, kl, *, n_head, d_k):
    B, S, D3 = qgv.shape
    D = n_head * d_k
    return pl.pallas_call(
        functools.partial(_attn_kernel, n_head=n_head, d_k=d_k,
                          scale=1.0 / math.sqrt(d_k)),
        out_shape=jax.ShapeDtypeStruct((B, S, D), jnp.float32),
        grid=(B,),
        in_specs=[
            pl.BlockSpec((1, S, D3), lambda b: (b, 0, 0)),
            pl.BlockSpec((1, S, D), lambda b: (b, 0, 0)),
        ],
        out_specs=pl.BlockSpec((1, S, D), lambda b: (b, 0, 0)),
        compiler_params=pltpu.CompilerParams(dimension_semantics=("parallel",)),
    )(qgv, kl)


# ---------------------------------------------------------------------------
# One-time parameter preparation (hoisted out of the forward pass).
# ---------------------------------------------------------------------------
def prepare_params(p, *, bn_eps=1e-5):
    f32, bf16 = jnp.float32, jnp.bfloat16
    D = p["ln1_g"].shape[0]
    prep = {}
    prep["ln1_g"] = p["ln1_g"].reshape(1, D).astype(f32)
    prep["ln1_b"] = p["ln1_b"].reshape(1, D).astype(f32)
    prep["ln2_g"] = p["ln2_g"].reshape(1, D).astype(f32)
    prep["ln2_b"] = p["ln2_b"].reshape(1, D).astype(f32)

    def fold_bn(conv_w, conv_b, g, b, mean, var):
        s = g / jnp.sqrt(var + bn_eps)
        w = conv_w * s[:, None, None]                       # (Cout, Cin, k)
        bb = conv_b * s + b - mean * s
        return jnp.transpose(w, (2, 1, 0)), bb              # (k, Cin, Cout)

    w3, b3 = fold_bn(p["conv3_w"], p["conv3_b"], p["bn_g"][:D], p["bn_b"][:D],
                     p["bn_mean"][:D], p["bn_var"][:D])
    w5, b5 = fold_bn(p["conv5_w"], p["conv5_b"], p["bn_g"][D:], p["bn_b"][D:],
                     p["bn_mean"][D:], p["bn_var"][D:])
    # Combine conv3 (pad=1) and conv5 (pad=2) into 5 taps over x padded by 2.
    w_comb = jnp.zeros((5, D, 2 * D), f32)
    w_comb = w_comb.at[1:4, :, :D].set(w3)
    w_comb = w_comb.at[:, :, D:].set(w5)
    prep["conv_w"] = w_comb.astype(bf16)
    prep["conv_b"] = jnp.concatenate([b3, b5]).reshape(1, 2 * D).astype(f32)

    # Fused q / k_global / v projection (all consume the LN1 output).
    prep["wqgv_w"] = jnp.concatenate(
        [p["wq_w"].T, p["wkg_w"].T, p["wv_w"].T], axis=1).astype(bf16)   # (D, 3D)
    prep["wqgv_b"] = jnp.concatenate(
        [p["wq_b"], p["wkg_b"], p["wv_b"]]).reshape(1, 3 * D).astype(f32)

    prep["wkl_w"] = p["wkl_w"].T.astype(bf16)               # (2D, D)
    prep["wkl_b"] = p["wkl_b"].reshape(1, D).astype(f32)
    prep["wo_w"] = p["wo_w"].T.astype(bf16)
    prep["wo_b"] = p["wo_b"].reshape(1, D).astype(f32)
    prep["w1_w"] = p["w1_w"].T.astype(bf16)
    prep["w1_b"] = p["w1_b"].reshape(1, -1).astype(f32)
    prep["w2_w"] = p["w2_w"].T.astype(bf16)
    prep["w2_b"] = p["w2_b"].reshape(1, D).astype(f32)
    return prep


# ---------------------------------------------------------------------------
# Forward pass (9 pallas_calls; residuals / GELU / bias all fused in-kernel).
# ---------------------------------------------------------------------------
def transformer_encoder(data, prep, *, n_head):
    B, S, D = data.shape
    d_k = D // n_head
    d2 = data.reshape(B * S, D)

    # TODO(synk): all Dropout layers are identity here (inference semantics).
    res = layer_norm(d2, prep["ln1_g"], prep["ln1_b"])                  # (BS, D)
    key_local = multiscale_conv(res.reshape(B, S, D),
                                prep["conv_w"], prep["conv_b"])         # (B,S,2D)
    qgv = linear(res, prep["wqgv_w"], prep["wqgv_b"])                   # (BS, 3D)
    k_l = linear(key_local.reshape(B * S, 2 * D),
                 prep["wkl_w"], prep["wkl_b"])                          # (BS, D)
    attn = dual_attention(qgv.reshape(B, S, 3 * D), k_l.reshape(B, S, D),
                          n_head=n_head, d_k=d_k)                       # (B,S,D)
    out = linear(attn.reshape(B * S, D), prep["wo_w"], prep["wo_b"],
                 residual=d2)                                           # data + proj
    res2 = layer_norm(out, prep["ln2_g"], prep["ln2_b"])
    h = linear(res2, prep["w1_w"], prep["w1_b"], activation="gelu")
    y = linear(h, prep["w2_w"], prep["w2_b"], residual=out)             # out + ffn
    return y.reshape(B, S, D)


# ---------------------------------------------------------------------------
# Params (PyTorch layouts), pure-JAX reference, and self-test.
# ---------------------------------------------------------------------------
def init_params(key, embed_dim, n_head, fc_ratio):
    D, H = embed_dim, embed_dim * fc_ratio
    keys = iter(jax.random.split(key, 24))

    def lin_init(k, out_f, in_f):
        bound = 1.0 / math.sqrt(in_f)
        kw, kb = jax.random.split(k)
        return (jax.random.uniform(kw, (out_f, in_f), jnp.float32, -bound, bound),
                jax.random.uniform(kb, (out_f,), jnp.float32, -bound, bound))

    def conv_init(k, out_c, in_c, ksz):
        bound = 1.0 / math.sqrt(in_c * ksz)
        kw, kb = jax.random.split(k)
        return (jax.random.uniform(kw, (out_c, in_c, ksz), jnp.float32, -bound, bound),
                jax.random.uniform(kb, (out_c,), jnp.float32, -bound, bound))

    p = {}
    p["ln1_g"] = 1.0 + 0.1 * jax.random.normal(next(keys), (D,), jnp.float32)
    p["ln1_b"] = 0.1 * jax.random.normal(next(keys), (D,), jnp.float32)
    p["ln2_g"] = 1.0 + 0.1 * jax.random.normal(next(keys), (D,), jnp.float32)
    p["ln2_b"] = 0.1 * jax.random.normal(next(keys), (D,), jnp.float32)
    p["conv3_w"], p["conv3_b"] = conv_init(next(keys), D, D, 3)
    p["conv5_w"], p["conv5_b"] = conv_init(next(keys), D, D, 5)
    p["bn_g"] = 1.0 + 0.1 * jax.random.normal(next(keys), (2 * D,), jnp.float32)
    p["bn_b"] = 0.1 * jax.random.normal(next(keys), (2 * D,), jnp.float32)
    p["bn_mean"] = 0.1 * jax.random.normal(next(keys), (2 * D,), jnp.float32)
    p["bn_var"] = 1.0 + 0.1 * jax.random.uniform(next(keys), (2 * D,), jnp.float32)
    p["wq_w"], p["wq_b"] = lin_init(next(keys), D, D)
    p["wkl_w"], p["wkl_b"] = lin_init(next(keys), D, 2 * D)
    p["wkg_w"], p["wkg_b"] = lin_init(next(keys), D, D)
    p["wv_w"], p["wv_b"] = lin_init(next(keys), D, D)
    p["wo_w"], p["wo_b"] = lin_init(next(keys), D, D)
    p["w1_w"], p["w1_b"] = lin_init(next(keys), H, D)
    p["w2_w"], p["w2_b"] = lin_init(next(keys), D, H)
    return p


def reference_forward(data, p, *, n_head, eps=1e-5):
    """Pure-JAX reference mirroring the PyTorch module; matmul operands are
    cast to bf16 (f32 accumulation) to match the kernels' MXU numerics."""
    B, S, D = data.shape
    d_k = D // n_head
    bf = jnp.bfloat16

    def mm(a, b):
        return jnp.dot(a.astype(bf), b.astype(bf),
                       preferred_element_type=jnp.float32)

    def ln(x, g, b):
        m = x.mean(-1, keepdims=True)
        v = ((x - m) ** 2).mean(-1, keepdims=True)
        return (x - m) / jnp.sqrt(v + eps) * g + b

    def lin(x, w, b):
        y = mm(x.reshape(-1, x.shape[-1]), w.T)
        return y.reshape(x.shape[:-1] + (w.shape[0],)) + b

    def conv1d(x_cl, w, b, pad):                            # torch Conv1d semantics
        k = w.shape[-1]
        xp = jnp.pad(x_cl, ((0, 0), (pad, pad), (0, 0)))
        acc = jnp.zeros((B, S, w.shape[0]), jnp.float32)
        for dt in range(k):
            acc = acc + mm(xp[:, dt:dt + S, :].reshape(B * S, -1),
                           w[:, :, dt].T).reshape(B, S, -1)
        return acc + b

    res = ln(data, p["ln1_g"], p["ln1_b"])
    kl = jnp.concatenate([conv1d(res, p["conv3_w"], p["conv3_b"], 1),
                          conv1d(res, p["conv5_w"], p["conv5_b"], 2)], axis=-1)
    bn_scale = p["bn_g"] / jnp.sqrt(p["bn_var"] + 1e-5)
    kl = (kl - p["bn_mean"]) * bn_scale + p["bn_b"]

    q = lin(res, p["wq_w"], p["wq_b"])
    k_l = lin(kl, p["wkl_w"], p["wkl_b"])
    k_g = lin(res, p["wkg_w"], p["wkg_b"])
    v = lin(res, p["wv_w"], p["wv_b"])

    def heads(t):
        return t.reshape(B, S, n_head, d_k).transpose(0, 2, 1, 3)

    qh, klh, kgh, vh = map(heads, (q, k_l, k_g, v))

    def qk(a, b):
        return jnp.einsum("bhqd,bhkd->bhqk", a.astype(bf), b.astype(bf),
                          preferred_element_type=jnp.float32)

    def pv(a, b):
        return jnp.einsum("bhqk,bhkd->bhqd", a.astype(bf), b.astype(bf),
                          preferred_element_type=jnp.float32)

    sl = qk(qh, klh) / math.sqrt(d_k)
    sg = qk(qh, kgh) / math.sqrt(d_k)
    xh = pv(jax.nn.softmax(sl, -1), vh) + pv(jax.nn.softmax(sg, -1), vh)
    xh = xh.transpose(0, 2, 1, 3).reshape(B, S, D)
    out = data + lin(xh, p["wo_w"], p["wo_b"])

    res2 = ln(out, p["ln2_g"], p["ln2_b"])
    h = jax.nn.gelu(lin(res2, p["w1_w"], p["w1_b"]), approximate=False)
    return out + lin(h, p["w2_w"], p["w2_b"])


if __name__ == "__main__":
    B, S, D = 2, 8, 16
    n_head, fc_ratio = 4, 2

    key = jax.random.PRNGKey(0)
    k_x, k_p = jax.random.split(key)
    data = jax.random.normal(k_x, (B, S, D), jnp.float32)
    raw_params = init_params(k_p, D, n_head, fc_ratio)
    prep_params = prepare_params(raw_params)        # one-time, outside the jit

    fwd = jax.jit(functools.partial(transformer_encoder, n_head=n_head))
    out = jax.block_until_ready(fwd(data, prep_params))

    ref = jax.block_until_ready(
        reference_forward(data, raw_params, n_head=n_head))

    assert out.shape == (B, S, D)
    max_err = float(jnp.max(jnp.abs(out - ref)))
    assert max_err < 1e-2, f"max abs error {max_err}"
    print("KERNEL_OK")
</pallas_src>

<mosaic_0001>
module attributes {stable_mosaic.version = 11 : i64} {
  func.func @_conv_kernel(%arg0: i32, %arg1: memref<1x12x16xf32, #tpu.memory_space<vmem>>, %arg2: memref<5x16x32xbf16, #tpu.memory_space<vmem>>, %arg3: memref<1x32xf32, #tpu.memory_space<vmem>>, %arg4: memref<1x8x32xf32, #tpu.memory_space<vmem>>) attributes {dimension_semantics = [#tpu.dimension_semantics<parallel>], iteration_bounds = array<i64: 2>, scalar_prefetch = 0 : i64, scratch_operands = 0 : i64, tpu.core_type = #tpu.core_type<tc>, window_params = [{transform_indices = @transform_0, window_bounds = array<i64: 1, 12, 16>}, {pipeline_mode = #tpu.pipeline_mode<synchronous>, transform_indices = @transform_1, window_bounds = array<i64: 5, 16, 32>}, {pipeline_mode = #tpu.pipeline_mode<synchronous>, transform_indices = @transform_2, window_bounds = array<i64: 1, 32>}, {transform_indices = @transform_3, window_bounds = array<i64: 1, 8, 32>}]} {
    %c0 = arith.constant 0 : index
    %c0_0 = arith.constant 0 : index
    %c0_1 = arith.constant 0 : index
    %0 = vector.load %arg1[%c0, %c0_0, %c0_1] : memref<1x12x16xf32, #tpu.memory_space<vmem>>, vector<1x12x16xf32>
    %1 = vector.shape_cast %0 : vector<1x12x16xf32> to vector<12x16xf32>
    %2 = arith.truncf %1 : vector<12x16xf32> to vector<12x16xbf16>
    %cst = arith.constant 0.000000e+00 : f32
    %3 = vector.broadcast %cst : f32 to vector<8x32xf32>
    %4 = vector.extract_strided_slice %2 {offsets = [0, 0], sizes = [8, 16], strides = [1, 1]} : vector<12x16xbf16> to vector<8x16xbf16>
    %c0_2 = arith.constant 0 : index
    %c0_3 = arith.constant 0 : index
    %c0_4 = arith.constant 0 : index
    %5 = vector.load %arg2[%c0_2, %c0_3, %c0_4] : memref<5x16x32xbf16, #tpu.memory_space<vmem>>, vector<1x16x32xbf16>
    %6 = vector.shape_cast %5 : vector<1x16x32xbf16> to vector<16x32xbf16>
    %cst_5 = arith.constant dense<0.000000e+00> : vector<8x32xf32>
    %7 = tpu.matmul %4, %6, %cst_5 {dimension_numbers = #tpu.dot_dimension_numbers<[1], [0], [0], [1], [0, 0, 1, 1], [], []>} : vector<8x16xbf16>, vector<16x32xbf16>, vector<8x32xf32> -> vector<8x32xf32>
    %8 = arith.addf %3, %7 : vector<8x32xf32>
    %9 = vector.extract_strided_slice %2 {offsets = [1, 0], sizes = [8, 16], strides = [1, 1]} : vector<12x16xbf16> to vector<8x16xbf16>
    %c1 = arith.constant 1 : index
    %c0_6 = arith.constant 0 : index
    %c0_7 = arith.constant 0 : index
    %10 = vector.load %arg2[%c1, %c0_6, %c0_7] : memref<5x16x32xbf16, #tpu.memory_space<vmem>>, vector<1x16x32xbf16>
    %11 = vector.shape_cast %10 : vector<1x16x32xbf16> to vector<16x32xbf16>
    %cst_8 = arith.constant dense<0.000000e+00> : vector<8x32xf32>
    %12 = tpu.matmul %9, %11, %cst_8 {dimension_numbers = #tpu.dot_dimension_numbers<[1], [0], [0], [1], [0, 0, 1, 1], [], []>} : vector<8x16xbf16>, vector<16x32xbf16>, vector<8x32xf32> -> vector<8x32xf32>
    %13 = arith.addf %8, %12 : vector<8x32xf32>
    %14 = vector.extract_strided_slice %2 {offsets = [2, 0], sizes = [8, 16], strides = [1, 1]} : vector<12x16xbf16> to vector<8x16xbf16>
    %c2 = arith.constant 2 : index
    %c0_9 = arith.constant 0 : index
    %c0_10 = arith.constant 0 : index
    %15 = vector.load %arg2[%c2, %c0_9, %c0_10] : memref<5x16x32xbf16, #tpu.memory_space<vmem>>, vector<1x16x32xbf16>
    %16 = vector.shape_cast %15 : vector<1x16x32xbf16> to vector<16x32xbf16>
    %cst_11 = arith.constant dense<0.000000e+00> : vector<8x32xf32>
    %17 = tpu.matmul %14, %16, %cst_11 {dimension_numbers = #tpu.dot_dimension_numbers<[1], [0], [0], [1], [0, 0, 1, 1], [], []>} : vector<8x16xbf16>, vector<16x32xbf16>, vector<8x32xf32> -> vector<8x32xf32>
    %18 = arith.addf %13, %17 : vector<8x32xf32>
    %19 = vector.extract_strided_slice %2 {offsets = [3, 0], sizes = [8, 16], strides = [1, 1]} : vector<12x16xbf16> to vector<8x16xbf16>
    %c3 = arith.constant 3 : index
    %c0_12 = arith.constant 0 : index
    %c0_13 = arith.constant 0 : index
    %20 = vector.load %arg2[%c3, %c0_12, %c0_13] : memref<5x16x32xbf16, #tpu.memory_space<vmem>>, vector<1x16x32xbf16>
    %21 = vector.shape_cast %20 : vector<1x16x32xbf16> to vector<16x32xbf16>
    %cst_14 = arith.constant dense<0.000000e+00> : vector<8x32xf32>
    %22 = tpu.matmul %19, %21, %cst_14 {dimension_numbers = #tpu.dot_dimension_numbers<[1], [0], [0], [1], [0, 0, 1, 1], [], []>} : vector<8x16xbf16>, vector<16x32xbf16>, vector<8x32xf32> -> vector<8x32xf32>
    %23 = arith.addf %18, %22 : vector<8x32xf32>
    %24 = vector.extract_strided_slice %2 {offsets = [4, 0], sizes = [8, 16], strides = [1, 1]} : vector<12x16xbf16> to vector<8x16xbf16>
    %c4 = arith.constant 4 : index
    %c0_15 = arith.constant 0 : index
    %c0_16 = arith.constant 0 : index
    %25 = vector.load %arg2[%c4, %c0_15, %c0_16] : memref<5x16x32xbf16, #tpu.memory_space<vmem>>, vector<1x16x32xbf16>
    %26 = vector.shape_cast %25 : vector<1x16x32xbf16> to vector<16x32xbf16>
    %cst_17 = arith.constant dense<0.000000e+00> : vector<8x32xf32>
    %27 = tpu.matmul %24, %26, %cst_17 {dimension_numbers = #tpu.dot_dimension_numbers<[1], [0], [0], [1], [0, 0, 1, 1], [], []>} : vector<8x16xbf16>, vector<16x32xbf16>, vector<8x32xf32> -> vector<8x32xf32>
    %28 = arith.addf %23, %27 : vector<8x32xf32>
    %c0_18 = arith.constant 0 : index
    %c0_19 = arith.constant 0 : index
    %29 = vector.load %arg3[%c0_18, %c0_19] : memref<1x32xf32, #tpu.memory_space<vmem>>, vector<1x32xf32>
    %30 = vector.broadcast %29 : vector<1x32xf32> to vector<8x32xf32>
    %31 = arith.addf %28, %30 : vector<8x32xf32>
    %c0_20 = arith.constant 0 : index
    %c0_21 = arith.constant 0 : index
    %c0_22 = arith.constant 0 : index
    %32 = vector.load %arg4[%c0_20, %c0_21, %c0_22] : memref<1x8x32xf32, #tpu.memory_space<vmem>>, vector<1x8x32xf32>
    %33 = vector.shape_cast %32 : vector<1x8x32xf32> to vector<8x32xf32>
    %34 = vector.shape_cast %31 : vector<8x32xf32> to vector<1x8x32xf32>
    tpu.vector_store %arg4[%c0_20, %c0_21, %c0_22], %34 {strides = array<i32>} : memref<1x8x32xf32, #tpu.memory_space<vmem>>, vector<1x8x32xf32>,
    return
  }
  func.func @transform_0(%arg0: i32) -> (i32, i32, i32) {
    %c0_i32 = arith.constant 0 : i32
    %c0_i32_0 = arith.constant 0 : i32
    %c0_i32_1 = arith.constant 0 : i32
    return %arg0, %c0_i32, %c0_i32_0 : i32, i32, i32
  }
  func.func @transform_1(%arg0: i32) -> (i32, i32, i32) {
    %c0_i32 = arith.constant 0 : i32
    %c0_i32_0 = arith.constant 0 : i32
    %c0_i32_1 = arith.constant 0 : i32
    %c0_i32_2 = arith.constant 0 : i32
    return %c0_i32, %c0_i32_0, %c0_i32_1 : i32, i32, i32
  }
  func.func @transform_2(%arg0: i32) -> (i32, i32) {
    %c0_i32 = arith.constant 0 : i32
    %c0_i32_0 = arith.constant 0 : i32
    %c0_i32_1 = arith.constant 0 : i32
    return %c0_i32, %c0_i32_0 : i32, i32
  }
  func.func @transform_3(%arg0: i32) -> (i32, i32, i32) {
    %c0_i32 = arith.constant 0 : i32
    %c0_i32_0 = arith.constant 0 : i32
    %c0_i32_1 = arith.constant 0 : i32
    return %arg0, %c0_i32, %c0_i32_0 : i32, i32, i32
  }
}

module attributes {stable_mosaic.version = 11 : i64} {
  func.func @_layernorm_kernel(%arg0: i32, %arg1: memref<16x16xf32, #tpu.memory_space<vmem>>, %arg2: memref<1x16xf32, #tpu.memory_space<vmem>>, %arg3: memref<1x16xf32, #tpu.memory_space<vmem>>, %arg4: memref<16x16xf32, #tpu.memory_space<vmem>>) attributes {dimension_semantics = [#tpu.dimension_semantics<parallel>], iteration_bounds = array<i64: 1>, scalar_prefetch = 0 : i64, scratch_operands = 0 : i64, tpu.core_type = #tpu.core_type<tc>, window_params = [{transform_indices = @transform_0, window_bounds = array<i64: 16, 16>}, {pipeline_mode = #tpu.pipeline_mode<synchronous>, transform_indices = @transform_1, window_bounds = array<i64: 1, 16>}, {pipeline_mode = #tpu.pipeline_mode<synchronous>, transform_indices = @transform_2, window_bounds = array<i64: 1, 16>}, {transform_indices = @transform_3, window_bounds = array<i64: 16, 16>}]} {
    %c0 = arith.constant 0 : index
    %c0_0 = arith.constant 0 : index
    %0 = vector.load %arg1[%c0, %c0_0] : memref<16x16xf32, #tpu.memory_space<vmem>>, vector<16x16xf32>
    %cst = arith.constant dense<0.000000e+00> : vector<16xf32>
    %1 = vector.multi_reduction <add>, %0, %cst [1] : vector<16x16xf32> to vector<16xf32>
    %2 = vector.shape_cast %1 : vector<16xf32> to vector<16x1xf32>
    %cst_1 = arith.constant 1.600000e+01 : f32
    %3 = vector.broadcast %cst_1 : f32 to vector<16x1xf32>
    %4 = arith.divf %2, %3 : vector<16x1xf32>
    %5 = vector.broadcast %4 : vector<16x1xf32> to vector<16x16xf32>
    %6 = arith.subf %0, %5 : vector<16x16xf32>
    %7 = arith.mulf %6, %6 : vector<16x16xf32>
    %cst_2 = arith.constant dense<0.000000e+00> : vector<16xf32>
    %8 = vector.multi_reduction <add>, %7, %cst_2 [1] : vector<16x16xf32> to vector<16xf32>
    %9 = vector.shape_cast %8 : vector<16xf32> to vector<16x1xf32>
    %cst_3 = arith.constant 1.600000e+01 : f32
    %10 = vector.broadcast %cst_3 : f32 to vector<16x1xf32>
    %11 = arith.divf %9, %10 : vector<16x1xf32>
    %cst_4 = arith.constant 9.99999974E-6 : f32
    %12 = vector.broadcast %cst_4 : f32 to vector<16x1xf32>
    %13 = arith.addf %11, %12 : vector<16x1xf32>
    %14 = math.rsqrt %13 : vector<16x1xf32>
    %15 = vector.broadcast %14 : vector<16x1xf32> to vector<16x16xf32>
    %16 = arith.mulf %6, %15 : vector<16x16xf32>
    %c0_5 = arith.constant 0 : index
    %c0_6 = arith.constant 0 : index
    %17 = vector.load %arg2[%c0_5, %c0_6] : memref<1x16xf32, #tpu.memory_space<vmem>>, vector<1x16xf32>
    %18 = vector.broadcast %17 : vector<1x16xf32> to vector<16x16xf32>
    %19 = arith.mulf %16, %18 : vector<16x16xf32>
    %c0_7 = arith.constant 0 : index
    %c0_8 = arith.constant 0 : index
    %20 = vector.load %arg3[%c0_7, %c0_8] : memref<1x16xf32, #tpu.memory_space<vmem>>, vector<1x16xf32>
    %21 = vector.broadcast %20 : vector<1x16xf32> to vector<16x16xf32>
    %22 = arith.addf %19, %21 : vector<16x16xf32>
    %c0_9 = arith.constant 0 : index
    %c0_10 = arith.constant 0 : index
    %23 = vector.load %arg4[%c0_9, %c0_10] : memref<16x16xf32, #tpu.memory_space<vmem>>, vector<16x16xf32>
    tpu.vector_store %arg4[%c0_9, %c0_10], %22 {strides = array<i32>} : memref<16x16xf32, #tpu.memory_space<vmem>>, vector<16x16xf32>,
    return
  }
  func.func @transform_0(%arg0: i32) -> (i32, i32) {
    %c0_i32 = arith.constant 0 : i32
    %c0_i32_0 = arith.constant 0 : i32
    return %arg0, %c0_i32 : i32, i32
  }
  func.func @transform_1(%arg0: i32) -> (i32, i32) {
    %c0_i32 = arith.constant 0 : i32
    %c0_i32_0 = arith.constant 0 : i32
    %c0_i32_1 = arith.constant 0 : i32
    return %c0_i32, %c0_i32_0 : i32, i32
  }
  func.func @transform_2(%arg0: i32) -> (i32, i32) {
    %c0_i32 = arith.constant 0 : i32
    %c0_i32_0 = arith.constant 0 : i32
    %c0_i32_1 = arith.constant 0 : i32
    return %c0_i32, %c0_i32_0 : i32, i32
  }
  func.func @transform_3(%arg0: i32) -> (i32, i32) {
    %c0_i32 = arith.constant 0 : i32
    %c0_i32_0 = arith.constant 0 : i32
    return %arg0, %c0_i32 : i32, i32
  }
}

module attributes {stable_mosaic.version = 11 : i64} {
  func.func @_linear_kernel(%arg0: i32, %arg1: i32, %arg2: i32, %arg3: memref<16x16xf32, #tpu.memory_space<vmem>>, %arg4: memref<16x48xbf16, #tpu.memory_space<vmem>>, %arg5: memref<1x48xf32, #tpu.memory_space<vmem>>, %arg6: memref<16x48xf32, #tpu.memory_space<vmem>>, %arg7: memref<16x48xf32, #tpu.memory_space<vmem>>) attributes {dimension_semantics = [#tpu.dimension_semantics<parallel>, #tpu.dimension_semantics<parallel>, #tpu.dimension_semantics<arbitrary>], iteration_bounds = array<i64: 1, 1, 1>, scalar_prefetch = 0 : i64, scratch_operands = 1 : i64, tpu.core_type = #tpu.core_type<tc>, window_params = [{transform_indices = @transform_0, window_bounds = array<i64: 16, 16>}, {transform_indices = @transform_1, window_bounds = array<i64: 16, 48>}, {transform_indices = @transform_2, window_bounds = array<i64: 1, 48>}, {transform_indices = @transform_3, window_bounds = array<i64: 16, 48>}]} {
    %c0_i32 = arith.constant 0 : i32
    %0 = arith.cmpi eq, %arg2, %c0_i32 : i32
    %1 = arith.extui %0 : i1 to i32
    %c0_i32_0 = arith.constant 0 : i32
    %2 = arith.cmpi ne, %1, %c0_i32_0 : i32
    scf.if %2 {
      %cst_10 = arith.constant 0.000000e+00 : f32
      %13 = vector.broadcast %cst_10 : f32 to vector<16x48xf32>
      %c0_11 = arith.constant 0 : index
      %c0_12 = arith.constant 0 : index
      %14 = vector.load %arg7[%c0_11, %c0_12] : memref<16x48xf32, #tpu.memory_space<vmem>>, vector<16x48xf32>
      tpu.vector_store %arg7[%c0_11, %c0_12], %13 {strides = array<i32>} : memref<16x48xf32, #tpu.memory_space<vmem>>, vector<16x48xf32>,
    } else {
    }
    %c0 = arith.constant 0 : index
    %c0_1 = arith.constant 0 : index
    %3 = vector.load %arg7[%c0, %c0_1] : memref<16x48xf32, #tpu.memory_space<vmem>>, vector<16x48xf32>
    %c0_2 = arith.constant 0 : index
    %c0_3 = arith.constant 0 : index
    %4 = vector.load %arg3[%c0_2, %c0_3] : memref<16x16xf32, #tpu.memory_space<vmem>>, vector<16x16xf32>
    %5 = arith.truncf %4 : vector<16x16xf32> to vector<16x16xbf16>
    %c0_4 = arith.constant 0 : index
    %c0_5 = arith.constant 0 : index
    %6 = vector.load %arg4[%c0_4, %c0_5] : memref<16x48xbf16, #tpu.memory_space<vmem>>, vector<16x48xbf16>
    %cst = arith.constant dense<0.000000e+00> : vector<16x48xf32>
    %7 = tpu.matmul %5, %6, %cst {dimension_numbers = #tpu.dot_dimension_numbers<[1], [0], [0], [1], [0, 0, 1, 1], [], []>} : vector<16x16xbf16>, vector<16x48xbf16>, vector<16x48xf32> -> vector<16x48xf32>
    %8 = arith.addf %3, %7 : vector<16x48xf32>
    %c0_6 = arith.constant 0 : index
    %c0_7 = arith.constant 0 : index
    %9 = vector.load %arg7[%c0_6, %c0_7] : memref<16x48xf32, #tpu.memory_space<vmem>>, vector<16x48xf32>
    tpu.vector_store %arg7[%c0_6, %c0_7], %8 {strides = array<i32>} : memref<16x48xf32, #tpu.memory_space<vmem>>, vector<16x48xf32>,
    %c0_i32_8 = arith.constant 0 : i32
    %10 = arith.cmpi eq, %arg2, %c0_i32_8 : i32
    %11 = arith.extui %10 : i1 to i32
    %c0_i32_9 = arith.constant 0 : i32
    %12 = arith.cmpi ne, %11, %c0_i32_9 : i32
    scf.if %12 {
      %c0_10 = arith.constant 0 : index
      %c0_11 = arith.constant 0 : index
      %13 = vector.load %arg7[%c0_10, %c0_11] : memref<16x48xf32, #tpu.memory_space<vmem>>, vector<16x48xf32>
      %c0_12 = arith.constant 0 : index
      %c0_13 = arith.constant 0 : index
      %14 = vector.load %arg5[%c0_12, %c0_13] : memref<1x48xf32, #tpu.memory_space<vmem>>, vector<1x48xf32>
      %15 = vector.broadcast %14 : vector<1x48xf32> to vector<16x48xf32>
      %16 = arith.addf %13, %15 : vector<16x48xf32>
      %c0_14 = arith.constant 0 : index
      %c0_15 = arith.constant 0 : index
      %17 = vector.load %arg6[%c0_14, %c0_15] : memref<16x48xf32, #tpu.memory_space<vmem>>, vector<16x48xf32>
      tpu.vector_store %arg6[%c0_14, %c0_15], %16 {strides = array<i32>} : memref<16x48xf32, #tpu.memory_space<vmem>>, vector<16x48xf32>,
    } else {
    }
    return
  }
  func.func @transform_0(%arg0: i32, %arg1: i32, %arg2: i32) -> (i32, i32) {
    %c0_i32 = arith.constant 0 : i32
    return %arg0, %arg2 : i32, i32
  }
  func.func @transform_1(%arg0: i32, %arg1: i32, %arg2: i32) -> (i32, i32) {
    %c0_i32 = arith.constant 0 : i32
    return %arg2, %arg1 : i32, i32
  }
  func.func @transform_2(%arg0: i32, %arg1: i32, %arg2: i32) -> (i32, i32) {
    %c0_i32 = arith.constant 0 : i32
    %c0_i32_0 = arith.constant 0 : i32
    return %c0_i32, %arg1 : i32, i32
  }
  func.func @transform_3(%arg0: i32, %arg1: i32, %arg2: i32) -> (i32, i32) {
    %c0_i32 = arith.constant 0 : i32
    return %arg0, %arg1 : i32, i32
  }
}

module attributes {stable_mosaic.version = 11 : i64} {
  func.func @_linear_kernel(%arg0: i32, %arg1: i32, %arg2: i32, %arg3: memref<16x32xf32, #tpu.memory_space<vmem>>, %arg4: memref<32x16xbf16, #tpu.memory_space<vmem>>, %arg5: memref<1x16xf32, #tpu.memory_space<vmem>>, %arg6: memref<16x16xf32, #tpu.memory_space<vmem>>, %arg7: memref<16x16xf32, #tpu.memory_space<vmem>>) attributes {dimension_semantics = [#tpu.dimension_semantics<parallel>, #tpu.dimension_semantics<parallel>, #tpu.dimension_semantics<arbitrary>], iteration_bounds = array<i64: 1, 1, 1>, scalar_prefetch = 0 : i64, scratch_operands = 1 : i64, tpu.core_type = #tpu.core_type<tc>, window_params = [{transform_indices = @transform_0, window_bounds = array<i64: 16, 32>}, {transform_indices = @transform_1, window_bounds = array<i64: 32, 16>}, {transform_indices = @transform_2, window_bounds = array<i64: 1, 16>}, {transform_indices = @transform_3, window_bounds = array<i64: 16, 16>}]} {
    %c0_i32 = arith.constant 0 : i32
    %0 = arith.cmpi eq, %arg2, %c0_i32 : i32
    %1 = arith.extui %0 : i1 to i32
    %c0_i32_0 = arith.constant 0 : i32
    %2 = arith.cmpi ne, %1, %c0_i32_0 : i32
    scf.if %2 {
      %cst_10 = arith.constant 0.000000e+00 : f32
      %13 = vector.broadcast %cst_10 : f32 to vector<16x16xf32>
      %c0_11 = arith.constant 0 : index
      %c0_12 = arith.constant 0 : index
      %14 = vector.load %arg7[%c0_11, %c0_12] : memref<16x16xf32, #tpu.memory_space<vmem>>, vector<16x16xf32>
      tpu.vector_store %arg7[%c0_11, %c0_12], %13 {strides = array<i32>} : memref<16x16xf32, #tpu.memory_space<vmem>>, vector<16x16xf32>,
    } else {
    }
    %c0 = arith.constant 0 : index
    %c0_1 = arith.constant 0 : index
    %3 = vector.load %arg7[%c0, %c0_1] : memref<16x16xf32, #tpu.memory_space<vmem>>, vector<16x16xf32>
    %c0_2 = arith.constant 0 : index
    %c0_3 = arith.constant 0 : index
    %4 = vector.load %arg3[%c0_2, %c0_3] : memref<16x32xf32, #tpu.memory_space<vmem>>, vector<16x32xf32>
    %5 = arith.truncf %4 : vector<16x32xf32> to vector<16x32xbf16>
    %c0_4 = arith.constant 0 : index
    %c0_5 = arith.constant 0 : index
    %6 = vector.load %arg4[%c0_4, %c0_5] : memref<32x16xbf16, #tpu.memory_space<vmem>>, vector<32x16xbf16>
    %cst = arith.constant dense<0.000000e+00> : vector<16x16xf32>
    %7 = tpu.matmul %5, %6, %cst {dimension_numbers = #tpu.dot_dimension_numbers<[1], [0], [0], [1], [0, 0, 1, 1], [], []>} : vector<16x32xbf16>, vector<32x16xbf16>, vector<16x16xf32> -> vector<16x16xf32>
    %8 = arith.addf %3, %7 : vector<16x16xf32>
    %c0_6 = arith.constant 0 : index
    %c0_7 = arith.constant 0 : index
    %9 = vector.load %arg7[%c0_6, %c0_7] : memref<16x16xf32, #tpu.memory_space<vmem>>, vector<16x16xf32>
    tpu.vector_store %arg7[%c0_6, %c0_7], %8 {strides = array<i32>} : memref<16x16xf32, #tpu.memory_space<vmem>>, vector<16x16xf32>,
    %c0_i32_8 = arith.constant 0 : i32
    %10 = arith.cmpi eq, %arg2, %c0_i32_8 : i32
    %11 = arith.extui %10 : i1 to i32
    %c0_i32_9 = arith.constant 0 : i32
    %12 = arith.cmpi ne, %11, %c0_i32_9 : i32
    scf.if %12 {
      %c0_10 = arith.constant 0 : index
      %c0_11 = arith.constant 0 : index
      %13 = vector.load %arg7[%c0_10, %c0_11] : memref<16x16xf32, #tpu.memory_space<vmem>>, vector<16x16xf32>
      %c0_12 = arith.constant 0 : index
      %c0_13 = arith.constant 0 : index
      %14 = vector.load %arg5[%c0_12, %c0_13] : memref<1x16xf32, #tpu.memory_space<vmem>>, vector<1x16xf32>
      %15 = vector.broadcast %14 : vector<1x16xf32> to vector<16x16xf32>
      %16 = arith.addf %13, %15 : vector<16x16xf32>
      %c0_14 = arith.constant 0 : index
      %c0_15 = arith.constant 0 : index
      %17 = vector.load %arg6[%c0_14, %c0_15] : memref<16x16xf32, #tpu.memory_space<vmem>>, vector<16x16xf32>
      tpu.vector_store %arg6[%c0_14, %c0_15], %16 {strides = array<i32>} : memref<16x16xf32, #tpu.memory_space<vmem>>, vector<16x16xf32>,
    } else {
    }
    return
  }
  func.func @transform_0(%arg0: i32, %arg1: i32, %arg2: i32) -> (i32, i32) {
    %c0_i32 = arith.constant 0 : i32
    return %arg0, %arg2 : i32, i32
  }
  func.func @transform_1(%arg0: i32, %arg1: i32, %arg2: i32) -> (i32, i32) {
    %c0_i32 = arith.constant 0 : i32
    return %arg2, %arg1 : i32, i32
  }
  func.func @transform_2(%arg0: i32, %arg1: i32, %arg2: i32) -> (i32, i32) {
    %c0_i32 = arith.constant 0 : i32
    %c0_i32_0 = arith.constant 0 : i32
    return %c0_i32, %arg1 : i32, i32
  }
  func.func @transform_3(%arg0: i32, %arg1: i32, %arg2: i32) -> (i32, i32) {
    %c0_i32 = arith.constant 0 : i32
    return %arg0, %arg1 : i32, i32
  }
}

module attributes {stable_mosaic.version = 11 : i64} {
  func.func @_linear_kernel(%arg0: i32, %arg1: i32, %arg2: i32, %arg3: memref<16x16xf32, #tpu.memory_space<vmem>>, %arg4: memref<16x16xbf16, #tpu.memory_space<vmem>>, %arg5: memref<1x16xf32, #tpu.memory_space<vmem>>, %arg6: memref<16x16xf32, #tpu.memory_space<vmem>>, %arg7: memref<16x16xf32, #tpu.memory_space<vmem>>, %arg8: memref<16x16xf32, #tpu.memory_space<vmem>>) attributes {dimension_semantics = [#tpu.dimension_semantics<parallel>, #tpu.dimension_semantics<parallel>, #tpu.dimension_semantics<arbitrary>], iteration_bounds = array<i64: 1, 1, 1>, scalar_prefetch = 0 : i64, scratch_operands = 1 : i64, tpu.core_type = #tpu.core_type<tc>, window_params = [{transform_indices = @transform_0, window_bounds = array<i64: 16, 16>}, {transform_indices = @transform_1, window_bounds = array<i64: 16, 16>}, {transform_indices = @transform_2, window_bounds = array<i64: 1, 16>}, {transform_indices = @transform_3, window_bounds = array<i64: 16, 16>}, {transform_indices = @transform_4, window_bounds = array<i64: 16, 16>}]} {
    %c0_i32 = arith.constant 0 : i32
    %0 = arith.cmpi eq, %arg2, %c0_i32 : i32
    %1 = arith.extui %0 : i1 to i32
    %c0_i32_0 = arith.constant 0 : i32
    %2 = arith.cmpi ne, %1, %c0_i32_0 : i32
    scf.if %2 {
      %cst_10 = arith.constant 0.000000e+00 : f32
      %13 = vector.broadcast %cst_10 : f32 to vector<16x16xf32>
      %c0_11 = arith.constant 0 : index
      %c0_12 = arith.constant 0 : index
      %14 = vector.load %arg8[%c0_11, %c0_12] : memref<16x16xf32, #tpu.memory_space<vmem>>, vector<16x16xf32>
      tpu.vector_store %arg8[%c0_11, %c0_12], %13 {strides = array<i32>} : memref<16x16xf32, #tpu.memory_space<vmem>>, vector<16x16xf32>,
    } else {
    }
    %c0 = arith.constant 0 : index
    %c0_1 = arith.constant 0 : index
    %3 = vector.load %arg8[%c0, %c0_1] : memref<16x16xf32, #tpu.memory_space<vmem>>, vector<16x16xf32>
    %c0_2 = arith.constant 0 : index
    %c0_3 = arith.constant 0 : index
    %4 = vector.load %arg3[%c0_2, %c0_3] : memref<16x16xf32, #tpu.memory_space<vmem>>, vector<16x16xf32>
    %5 = arith.truncf %4 : vector<16x16xf32> to vector<16x16xbf16>
    %c0_4 = arith.constant 0 : index
    %c0_5 = arith.constant 0 : index
    %6 = vector.load %arg4[%c0_4, %c0_5] : memref<16x16xbf16, #tpu.memory_space<vmem>>, vector<16x16xbf16>
    %cst = arith.constant dense<0.000000e+00> : vector<16x16xf32>
    %7 = tpu.matmul %5, %6, %cst {dimension_numbers = #tpu.dot_dimension_numbers<[1], [0], [0], [1], [0, 0, 1, 1], [], []>} : vector<16x16xbf16>, vector<16x16xbf16>, vector<16x16xf32> -> vector<16x16xf32>
    %8 = arith.addf %3, %7 : vector<16x16xf32>
    %c0_6 = arith.constant 0 : index
    %c0_7 = arith.constant 0 : index
    %9 = vector.load %arg8[%c0_6, %c0_7] : memref<16x16xf32, #tpu.memory_space<vmem>>, vector<16x16xf32>
    tpu.vector_store %arg8[%c0_6, %c0_7], %8 {strides = array<i32>} : memref<16x16xf32, #tpu.memory_space<vmem>>, vector<16x16xf32>,
    %c0_i32_8 = arith.constant 0 : i32
    %10 = arith.cmpi eq, %arg2, %c0_i32_8 : i32
    %11 = arith.extui %10 : i1 to i32
    %c0_i32_9 = arith.constant 0 : i32
    %12 = arith.cmpi ne, %11, %c0_i32_9 : i32
    scf.if %12 {
      %c0_10 = arith.constant 0 : index
      %c0_11 = arith.constant 0 : index
      %13 = vector.load %arg8[%c0_10, %c0_11] : memref<16x16xf32, #tpu.memory_space<vmem>>, vector<16x16xf32>
      %c0_12 = arith.constant 0 : index
      %c0_13 = arith.constant 0 : index
      %14 = vector.load %arg5[%c0_12, %c0_13] : memref<1x16xf32, #tpu.memory_space<vmem>>, vector<1x16xf32>
      %15 = vector.broadcast %14 : vector<1x16xf32> to vector<16x16xf32>
      %16 = arith.addf %13, %15 : vector<16x16xf32>
      %c0_14 = arith.constant 0 : index
      %c0_15 = arith.constant 0 : index
      %17 = vector.load %arg6[%c0_14, %c0_15] : memref<16x16xf32, #tpu.memory_space<vmem>>, vector<16x16xf32>
      %18 = arith.addf %16, %17 : vector<16x16xf32>
      %c0_16 = arith.constant 0 : index
      %c0_17 = arith.constant 0 : index
      %19 = vector.load %arg7[%c0_16, %c0_17] : memref<16x16xf32, #tpu.memory_space<vmem>>, vector<16x16xf32>
      tpu.vector_store %arg7[%c0_16, %c0_17], %18 {strides = array<i32>} : memref<16x16xf32, #tpu.memory_space<vmem>>, vector<16x16xf32>,
    } else {
    }
    return
  }
  func.func @transform_0(%arg0: i32, %arg1: i32, %arg2: i32) -> (i32, i32) {
    %c0_i32 = arith.constant 0 : i32
    return %arg0, %arg2 : i32, i32
  }
  func.func @transform_1(%arg0: i32, %arg1: i32, %arg2: i32) -> (i32, i32) {
    %c0_i32 = arith.constant 0 : i32
    return %arg2, %arg1 : i32, i32
  }
  func.func @transform_2(%arg0: i32, %arg1: i32, %arg2: i32) -> (i32, i32) {
    %c0_i32 = arith.constant 0 : i32
    %c0_i32_0 = arith.constant 0 : i32
    return %c0_i32, %arg1 : i32, i32
  }
  func.func @transform_3(%arg0: i32, %arg1: i32, %arg2: i32) -> (i32, i32) {
    %c0_i32 = arith.constant 0 : i32
    return %arg0, %arg1 : i32, i32
  }
  func.func @transform_4(%arg0: i32, %arg1: i32, %arg2: i32) -> (i32, i32) {
    %c0_i32 = arith.constant 0 : i32
    return %arg0, %arg1 : i32, i32
  }
}

module attributes {stable_mosaic.version = 11 : i64} {
  func.func @_linear_kernel(%arg0: i32, %arg1: i32, %arg2: i32, %arg3: memref<16x16xf32, #tpu.memory_space<vmem>>, %arg4: memref<16x32xbf16, #tpu.memory_space<vmem>>, %arg5: memref<1x32xf32, #tpu.memory_space<vmem>>, %arg6: memref<16x32xf32, #tpu.memory_space<vmem>>, %arg7: memref<16x32xf32, #tpu.memory_space<vmem>>) attributes {dimension_semantics = [#tpu.dimension_semantics<parallel>, #tpu.dimension_semantics<parallel>, #tpu.dimension_semantics<arbitrary>], iteration_bounds = array<i64: 1, 1, 1>, scalar_prefetch = 0 : i64, scratch_operands = 1 : i64, tpu.core_type = #tpu.core_type<tc>, window_params = [{transform_indices = @transform_0, window_bounds = array<i64: 16, 16>}, {transform_indices = @transform_1, window_bounds = array<i64: 16, 32>}, {transform_indices = @transform_2, window_bounds = array<i64: 1, 32>}, {transform_indices = @transform_3, window_bounds = array<i64: 16, 32>}]} {
    %c0_i32 = arith.constant 0 : i32
    %0 = arith.cmpi eq, %arg2, %c0_i32 : i32
    %1 = arith.extui %0 : i1 to i32
    %c0_i32_0 = arith.constant 0 : i32
    %2 = arith.cmpi ne, %1, %c0_i32_0 : i32
    scf.if %2 {
      %cst_10 = arith.constant 0.000000e+00 : f32
      %13 = vector.broadcast %cst_10 : f32 to vector<16x32xf32>
      %c0_11 = arith.constant 0 : index
      %c0_12 = arith.constant 0 : index
      %14 = vector.load %arg7[%c0_11, %c0_12] : memref<16x32xf32, #tpu.memory_space<vmem>>, vector<16x32xf32>
      tpu.vector_store %arg7[%c0_11, %c0_12], %13 {strides = array<i32>} : memref<16x32xf32, #tpu.memory_space<vmem>>, vector<16x32xf32>,
    } else {
    }
    %c0 = arith.constant 0 : index
    %c0_1 = arith.constant 0 : index
    %3 = vector.load %arg7[%c0, %c0_1] : memref<16x32xf32, #tpu.memory_space<vmem>>, vector<16x32xf32>
    %c0_2 = arith.constant 0 : index
    %c0_3 = arith.constant 0 : index
    %4 = vector.load %arg3[%c0_2, %c0_3] : memref<16x16xf32, #tpu.memory_space<vmem>>, vector<16x16xf32>
    %5 = arith.truncf %4 : vector<16x16xf32> to vector<16x16xbf16>
    %c0_4 = arith.constant 0 : index
    %c0_5 = arith.constant 0 : index
    %6 = vector.load %arg4[%c0_4, %c0_5] : memref<16x32xbf16, #tpu.memory_space<vmem>>, vector<16x32xbf16>
    %cst = arith.constant dense<0.000000e+00> : vector<16x32xf32>
    %7 = tpu.matmul %5, %6, %cst {dimension_numbers = #tpu.dot_dimension_numbers<[1], [0], [0], [1], [0, 0, 1, 1], [], []>} : vector<16x16xbf16>, vector<16x32xbf16>, vector<16x32xf32> -> vector<16x32xf32>
    %8 = arith.addf %3, %7 : vector<16x32xf32>
    %c0_6 = arith.constant 0 : index
    %c0_7 = arith.constant 0 : index
    %9 = vector.load %arg7[%c0_6, %c0_7] : memref<16x32xf32, #tpu.memory_space<vmem>>, vector<16x32xf32>
    tpu.vector_store %arg7[%c0_6, %c0_7], %8 {strides = array<i32>} : memref<16x32xf32, #tpu.memory_space<vmem>>, vector<16x32xf32>,
    %c0_i32_8 = arith.constant 0 : i32
    %10 = arith.cmpi eq, %arg2, %c0_i32_8 : i32
    %11 = arith.extui %10 : i1 to i32
    %c0_i32_9 = arith.constant 0 : i32
    %12 = arith.cmpi ne, %11, %c0_i32_9 : i32
    scf.if %12 {
      %c0_10 = arith.constant 0 : index
      %c0_11 = arith.constant 0 : index
      %13 = vector.load %arg7[%c0_10, %c0_11] : memref<16x32xf32, #tpu.memory_space<vmem>>, vector<16x32xf32>
      %c0_12 = arith.constant 0 : index
      %c0_13 = arith.constant 0 : index
      %14 = vector.load %arg5[%c0_12, %c0_13] : memref<1x32xf32, #tpu.memory_space<vmem>>, vector<1x32xf32>
      %15 = vector.broadcast %14 : vector<1x32xf32> to vector<16x32xf32>
      %16 = arith.addf %13, %15 : vector<16x32xf32>
      %cst_14 = arith.constant 5.000000e-01 : f32
      %17 = vector.broadcast %cst_14 : f32 to vector<16x32xf32>
      %18 = arith.mulf %17, %16 : vector<16x32xf32>
      %cst_15 = arith.constant 0.707106769 : f32
      %19 = vector.broadcast %cst_15 : f32 to vector<16x32xf32>
      %20 = arith.mulf %16, %19 : vector<16x32xf32>
      %21 = math.absf %20 : vector<16x32xf32>
      %cst_16 = arith.constant 0.327591091 : f32
      %22 = vector.broadcast %cst_16 : f32 to vector<16x32xf32>
      %23 = arith.mulf %22, %21 : vector<16x32xf32>
      %cst_17 = arith.constant 1.000000e+00 : f32
      %24 = vector.broadcast %cst_17 : f32 to vector<16x32xf32>
      %25 = arith.addf %24, %23 : vector<16x32xf32>
      %cst_18 = arith.constant 1.000000e+00 : f32
      %26 = vector.broadcast %cst_18 : f32 to vector<16x32xf32>
      %27 = arith.divf %26, %25 : vector<16x32xf32>
      %cst_19 = arith.constant 1.06140542 : f32
      %28 = vector.broadcast %cst_19 : f32 to vector<16x32xf32>
      %29 = arith.mulf %28, %27 : vector<16x32xf32>
      %cst_20 = arith.constant -1.45315206 : f32
      %30 = vector.broadcast %cst_20 : f32 to vector<16x32xf32>
      %31 = arith.addf %29, %30 : vector<16x32xf32>
      %32 = arith.mulf %31, %27 : vector<16x32xf32>
      %cst_21 = arith.constant 1.42141378 : f32
      %33 = vector.broadcast %cst_21 : f32 to vector<16x32xf32>
      %34 = arith.addf %32, %33 : vector<16x32xf32>
      %35 = arith.mulf %34, %27 : vector<16x32xf32>
      %cst_22 = arith.constant -0.284496725 : f32
      %36 = vector.broadcast %cst_22 : f32 to vector<16x32xf32>
      %37 = arith.addf %35, %36 : vector<16x32xf32>
      %38 = arith.mulf %37, %27 : vector<16x32xf32>
      %cst_23 = arith.constant 0.254829586 : f32
      %39 = vector.broadcast %cst_23 : f32 to vector<16x32xf32>
      %40 = arith.addf %38, %39 : vector<16x32xf32>
      %41 = arith.mulf %40, %27 : vector<16x32xf32>
      %cst_24 = arith.constant 0.000000e+00 : f32
      %42 = vector.broadcast %cst_24 : f32 to vector<16x32xf32>
      %43 = arith.subf %42, %21 : vector<16x32xf32>
      %44 = arith.mulf %43, %21 : vector<16x32xf32>
      %45 = math.exp %44 : vector<16x32xf32>
      %46 = arith.mulf %41, %45 : vector<16x32xf32>
      %cst_25 = arith.constant 1.000000e+00 : f32
      %47 = vector.broadcast %cst_25 : f32 to vector<16x32xf32>
      %48 = arith.subf %47, %46 : vector<16x32xf32>
      %cst_26 = arith.constant 0.000000e+00 : f32
      %49 = vector.broadcast %cst_26 : f32 to vector<16x32xf32>
      %50 = arith.cmpf oge, %20, %49 : vector<16x32xf32>
      %cst_27 = arith.constant 0.000000e+00 : f32
      %51 = vector.broadcast %cst_27 : f32 to vector<16x32xf32>
      %52 = arith.subf %51, %48 : vector<16x32xf32>
      %53 = arith.select %50, %48, %52 : vector<16x32xi1>, vector<16x32xf32>
      %cst_28 = arith.constant 1.000000e+00 : f32
      %54 = vector.broadcast %cst_28 : f32 to vector<16x32xf32>
      %55 = arith.addf %54, %53 : vector<16x32xf32>
      %56 = arith.mulf %18, %55 : vector<16x32xf32>
      %c0_29 = arith.constant 0 : index
      %c0_30 = arith.constant 0 : index
      %57 = vector.load %arg6[%c0_29, %c0_30] : memref<16x32xf32, #tpu.memory_space<vmem>>, vector<16x32xf32>
      tpu.vector_store %arg6[%c0_29, %c0_30], %56 {strides = array<i32>} : memref<16x32xf32, #tpu.memory_space<vmem>>, vector<16x32xf32>,
    } else {
    }
    return
  }
  func.func @transform_0(%arg0: i32, %arg1: i32, %arg2: i32) -> (i32, i32) {
    %c0_i32 = arith.constant 0 : i32
    return %arg0, %arg2 : i32, i32
  }
  func.func @transform_1(%arg0: i32, %arg1: i32, %arg2: i32) -> (i32, i32) {
    %c0_i32 = arith.constant 0 : i32
    return %arg2, %arg1 : i32, i32
  }
  func.func @transform_2(%arg0: i32, %arg1: i32, %arg2: i32) -> (i32, i32) {
    %c0_i32 = arith.constant 0 : i32
    %c0_i32_0 = arith.constant 0 : i32
    return %c0_i32, %arg1 : i32, i32
  }
  func.func @transform_3(%arg0: i32, %arg1: i32, %arg2: i32) -> (i32, i32) {
    %c0_i32 = arith.constant 0 : i32
    return %arg0, %arg1 : i32, i32
  }
}

module attributes {stable_mosaic.version = 11 : i64} {
  func.func @_linear_kernel(%arg0: i32, %arg1: i32, %arg2: i32, %arg3: memref<16x32xf32, #tpu.memory_space<vmem>>, %arg4: memref<32x16xbf16, #tpu.memory_space<vmem>>, %arg5: memref<1x16xf32, #tpu.memory_space<vmem>>, %arg6: memref<16x16xf32, #tpu.memory_space<vmem>>, %arg7: memref<16x16xf32, #tpu.memory_space<vmem>>, %arg8: memref<16x16xf32, #tpu.memory_space<vmem>>) attributes {dimension_semantics = [#tpu.dimension_semantics<parallel>, #tpu.dimension_semantics<parallel>, #tpu.dimension_semantics<arbitrary>], iteration_bounds = array<i64: 1, 1, 1>, scalar_prefetch = 0 : i64, scratch_operands = 1 : i64, tpu.core_type = #tpu.core_type<tc>, window_params = [{transform_indices = @transform_0, window_bounds = array<i64: 16, 32>}, {transform_indices = @transform_1, window_bounds = array<i64: 32, 16>}, {transform_indices = @transform_2, window_bounds = array<i64: 1, 16>}, {transform_indices = @transform_3, window_bounds = array<i64: 16, 16>}, {transform_indices = @transform_4, window_bounds = array<i64: 16, 16>}]} {
    %c0_i32 = arith.constant 0 : i32
    %0 = arith.cmpi eq, %arg2, %c0_i32 : i32
    %1 = arith.extui %0 : i1 to i32
    %c0_i32_0 = arith.constant 0 : i32
    %2 = arith.cmpi ne, %1, %c0_i32_0 : i32
    scf.if %2 {
      %cst_10 = arith.constant 0.000000e+00 : f32
      %13 = vector.broadcast %cst_10 : f32 to vector<16x16xf32>
      %c0_11 = arith.constant 0 : index
      %c0_12 = arith.constant 0 : index
      %14 = vector.load %arg8[%c0_11, %c0_12] : memref<16x16xf32, #tpu.memory_space<vmem>>, vector<16x16xf32>
      tpu.vector_store %arg8[%c0_11, %c0_12], %13 {strides = array<i32>} : memref<16x16xf32, #tpu.memory_space<vmem>>, vector<16x16xf32>,
    } else {
    }
    %c0 = arith.constant 0 : index
    %c0_1 = arith.constant 0 : index
    %3 = vector.load %arg8[%c0, %c0_1] : memref<16x16xf32, #tpu.memory_space<vmem>>, vector<16x16xf32>
    %c0_2 = arith.constant 0 : index
    %c0_3 = arith.constant 0 : index
    %4 = vector.load %arg3[%c0_2, %c0_3] : memref<16x32xf32, #tpu.memory_space<vmem>>, vector<16x32xf32>
    %5 = arith.truncf %4 : vector<16x32xf32> to vector<16x32xbf16>
    %c0_4 = arith.constant 0 : index
    %c0_5 = arith.constant 0 : index
    %6 = vector.load %arg4[%c0_4, %c0_5] : memref<32x16xbf16, #tpu.memory_space<vmem>>, vector<32x16xbf16>
    %cst = arith.constant dense<0.000000e+00> : vector<16x16xf32>
    %7 = tpu.matmul %5, %6, %cst {dimension_numbers = #tpu.dot_dimension_numbers<[1], [0], [0], [1], [0, 0, 1, 1], [], []>} : vector<16x32xbf16>, vector<32x16xbf16>, vector<16x16xf32> -> vector<16x16xf32>
    %8 = arith.addf %3, %7 : vector<16x16xf32>
    %c0_6 = arith.constant 0 : index
    %c0_7 = arith.constant 0 : index
    %9 = vector.load %arg8[%c0_6, %c0_7] : memref<16x16xf32, #tpu.memory_space<vmem>>, vector<16x16xf32>
    tpu.vector_store %arg8[%c0_6, %c0_7], %8 {strides = array<i32>} : memref<16x16xf32, #tpu.memory_space<vmem>>, vector<16x16xf32>,
    %c0_i32_8 = arith.constant 0 : i32
    %10 = arith.cmpi eq, %arg2, %c0_i32_8 : i32
    %11 = arith.extui %10 : i1 to i32
    %c0_i32_9 = arith.constant 0 : i32
    %12 = arith.cmpi ne, %11, %c0_i32_9 : i32
    scf.if %12 {
      %c0_10 = arith.constant 0 : index
      %c0_11 = arith.constant 0 : index
      %13 = vector.load %arg8[%c0_10, %c0_11] : memref<16x16xf32, #tpu.memory_space<vmem>>, vector<16x16xf32>
      %c0_12 = arith.constant 0 : index
      %c0_13 = arith.constant 0 : index
      %14 = vector.load %arg5[%c0_12, %c0_13] : memref<1x16xf32, #tpu.memory_space<vmem>>, vector<1x16xf32>
      %15 = vector.broadcast %14 : vector<1x16xf32> to vector<16x16xf32>
      %16 = arith.addf %13, %15 : vector<16x16xf32>
      %c0_14 = arith.constant 0 : index
      %c0_15 = arith.constant 0 : index
      %17 = vector.load %arg6[%c0_14, %c0_15] : memref<16x16xf32, #tpu.memory_space<vmem>>, vector<16x16xf32>
      %18 = arith.addf %16, %17 : vector<16x16xf32>
      %c0_16 = arith.constant 0 : index
      %c0_17 = arith.constant 0 : index
      %19 = vector.load %arg7[%c0_16, %c0_17] : memref<16x16xf32, #tpu.memory_space<vmem>>, vector<16x16xf32>
      tpu.vector_store %arg7[%c0_16, %c0_17], %18 {strides = array<i32>} : memref<16x16xf32, #tpu.memory_space<vmem>>, vector<16x16xf32>,
    } else {
    }
    return
  }
  func.func @transform_0(%arg0: i32, %arg1: i32, %arg2: i32) -> (i32, i32) {
    %c0_i32 = arith.constant 0 : i32
    return %arg0, %arg2 : i32, i32
  }
  func.func @transform_1(%arg0: i32, %arg1: i32, %arg2: i32) -> (i32, i32) {
    %c0_i32 = arith.constant 0 : i32
    return %arg2, %arg1 : i32, i32
  }
  func.func @transform_2(%arg0: i32, %arg1: i32, %arg2: i32) -> (i32, i32) {
    %c0_i32 = arith.constant 0 : i32
    %c0_i32_0 = arith.constant 0 : i32
    return %c0_i32, %arg1 : i32, i32
  }
  func.func @transform_3(%arg0: i32, %arg1: i32, %arg2: i32) -> (i32, i32) {
    %c0_i32 = arith.constant 0 : i32
    return %arg0, %arg1 : i32, i32
  }
  func.func @transform_4(%arg0: i32, %arg1: i32, %arg2: i32) -> (i32, i32) {
    %c0_i32 = arith.constant 0 : i32
    return %arg0, %arg1 : i32, i32
  }
}

module attributes {stable_mosaic.version = 11 : i64} {
  func.func @_attn_kernel(%arg0: i32, %arg1: memref<1x8x48xf32, #tpu.memory_space<vmem>>, %arg2: memref<1x8x16xf32, #tpu.memory_space<vmem>>, %arg3: memref<1x8x16xf32, #tpu.memory_space<vmem>>) attributes {dimension_semantics = [#tpu.dimension_semantics<parallel>], iteration_bounds = array<i64: 2>, scalar_prefetch = 0 : i64, scratch_operands = 0 : i64, tpu.core_type = #tpu.core_type<tc>, window_params = [{transform_indices = @transform_0, window_bounds = array<i64: 1, 8, 48>}, {transform_indices = @transform_1, window_bounds = array<i64: 1, 8, 16>}, {transform_indices = @transform_2, window_bounds = array<i64: 1, 8, 16>}]} {
    %c0 = arith.constant 0 : index
    %c0_0 = arith.constant 0 : index
    %c0_1 = arith.constant 0 : index
    %0 = vector.load %arg1[%c0, %c0_0, %c0_1] : memref<1x8x48xf32, #tpu.memory_space<vmem>>, vector<1x8x48xf32>
    %1 = vector.shape_cast %0 : vector<1x8x48xf32> to vector<8x48xf32>
    %2 = vector.extract_strided_slice %1 {offsets = [0, 0], sizes = [8, 16], strides = [1, 1]} : vector<8x48xf32> to vector<8x16xf32>
    %cst = arith.constant 5.000000e-01 : f32
    %3 = vector.broadcast %cst : f32 to vector<8x16xf32>
    %4 = arith.mulf %2, %3 : vector<8x16xf32>
    %5 = arith.truncf %4 : vector<8x16xf32> to vector<8x16xbf16>
    %6 = vector.extract_strided_slice %1 {offsets = [0, 16], sizes = [8, 16], strides = [1, 1]} : vector<8x48xf32> to vector<8x16xf32>
    %7 = arith.truncf %6 : vector<8x16xf32> to vector<8x16xbf16>
    %8 = vector.extract_strided_slice %1 {offsets = [0, 32], sizes = [8, 16], strides = [1, 1]} : vector<8x48xf32> to vector<8x16xf32>
    %9 = arith.truncf %8 : vector<8x16xf32> to vector<8x16xbf16>
    %c0_2 = arith.constant 0 : index
    %c0_3 = arith.constant 0 : index
    %c0_4 = arith.constant 0 : index
    %10 = vector.load %arg2[%c0_2, %c0_3, %c0_4] : memref<1x8x16xf32, #tpu.memory_space<vmem>>, vector<1x8x16xf32>
    %11 = vector.shape_cast %10 : vector<1x8x16xf32> to vector<8x16xf32>
    %12 = arith.truncf %11 : vector<8x16xf32> to vector<8x16xbf16>
    %13 = vector.extract_strided_slice %5 {offsets = [0, 0], sizes = [8, 4], strides = [1, 1]} : vector<8x16xbf16> to vector<8x4xbf16>
    %14 = vector.extract_strided_slice %12 {offsets = [0, 0], sizes = [8, 4], strides = [1, 1]} : vector<8x16xbf16> to vector<8x4xbf16>
    %cst_5 = arith.constant dense<0.000000e+00> : vector<8x8xf32>
    %15 = tpu.matmul %13, %14, %cst_5 {dimension_numbers = #tpu.dot_dimension_numbers<[1], [1], [0], [0], [0, 0, 1, 0], [], []>} : vector<8x4xbf16>, vector<8x4xbf16>, vector<8x8xf32> -> vector<8x8xf32>
    %16 = vector.extract_strided_slice %5 {offsets = [0, 0], sizes = [8, 4], strides = [1, 1]} : vector<8x16xbf16> to vector<8x4xbf16>
    %17 = vector.extract_strided_slice %7 {offsets = [0, 0], sizes = [8, 4], strides = [1, 1]} : vector<8x16xbf16> to vector<8x4xbf16>
    %cst_6 = arith.constant dense<0.000000e+00> : vector<8x8xf32>
    %18 = tpu.matmul %16, %17, %cst_6 {dimension_numbers = #tpu.dot_dimension_numbers<[1], [1], [0], [0], [0, 0, 1, 0], [], []>} : vector<8x4xbf16>, vector<8x4xbf16>, vector<8x8xf32> -> vector<8x8xf32>
    %cst_7 = arith.constant dense<0xFF800000> : vector<8xf32>
    %19 = vector.multi_reduction <maximumf>, %15, %cst_7 [1] : vector<8x8xf32> to vector<8xf32>
    %20 = vector.shape_cast %19 : vector<8xf32> to vector<8x1xf32>
    %21 = vector.broadcast %20 : vector<8x1xf32> to vector<8x8xf32>
    %22 = arith.subf %15, %21 : vector<8x8xf32>
    %23 = math.exp %22 : vector<8x8xf32>
    %cst_8 = arith.constant dense<0.000000e+00> : vector<8xf32>
    %24 = vector.multi_reduction <add>, %23, %cst_8 [1] : vector<8x8xf32> to vector<8xf32>
    %25 = vector.shape_cast %24 : vector<8xf32> to vector<8x1xf32>
    %26 = tpu.reciprocal %25 {approx = true} : vector<8x1xf32> -> vector<8x1xf32>
    %27 = vector.broadcast %26 : vector<8x1xf32> to vector<8x8xf32>
    %28 = arith.mulf %23, %27 : vector<8x8xf32>
    %cst_9 = arith.constant dense<0xFF800000> : vector<8xf32>
    %29 = vector.multi_reduction <maximumf>, %18, %cst_9 [1] : vector<8x8xf32> to vector<8xf32>
    %30 = vector.shape_cast %29 : vector<8xf32> to vector<8x1xf32>
    %31 = vector.broadcast %30 : vector<8x1xf32> to vector<8x8xf32>
    %32 = arith.subf %18, %31 : vector<8x8xf32>
    %33 = math.exp %32 : vector<8x8xf32>
    %cst_10 = arith.constant dense<0.000000e+00> : vector<8xf32>
    %34 = vector.multi_reduction <add>, %33, %cst_10 [1] : vector<8x8xf32> to vector<8xf32>
    %35 = vector.shape_cast %34 : vector<8xf32> to vector<8x1xf32>
    %36 = tpu.reciprocal %35 {approx = true} : vector<8x1xf32> -> vector<8x1xf32>
    %37 = vector.broadcast %36 : vector<8x1xf32> to vector<8x8xf32>
    %38 = arith.mulf %33, %37 : vector<8x8xf32>
    %39 = arith.addf %28, %38 : vector<8x8xf32>
    %40 = arith.truncf %39 : vector<8x8xf32> to vector<8x8xbf16>
    %41 = vector.extract_strided_slice %9 {offsets = [0, 0], sizes = [8, 4], strides = [1, 1]} : vector<8x16xbf16> to vector<8x4xbf16>
    %cst_11 = arith.constant dense<0.000000e+00> : vector<8x4xf32>
    %42 = tpu.matmul %40, %41, %cst_11 {dimension_numbers = #tpu.dot_dimension_numbers<[1], [0], [0], [1], [0, 0, 1, 1], [], []>} : vector<8x8xbf16>, vector<8x4xbf16>, vector<8x4xf32> -> vector<8x4xf32>
    %43 = vector.extract_strided_slice %5 {offsets = [0, 4], sizes = [8, 4], strides = [1, 1]} : vector<8x16xbf16> to vector<8x4xbf16>
    %44 = vector.extract_strided_slice %12 {offsets = [0, 4], sizes = [8, 4], strides = [1, 1]} : vector<8x16xbf16> to vector<8x4xbf16>
    %cst_12 = arith.constant dense<0.000000e+00> : vector<8x8xf32>
    %45 = tpu.matmul %43, %44, %cst_12 {dimension_numbers = #tpu.dot_dimension_numbers<[1], [1], [0], [0], [0, 0, 1, 0], [], []>} : vector<8x4xbf16>, vector<8x4xbf16>, vector<8x8xf32> -> vector<8x8xf32>
    %46 = vector.extract_strided_slice %5 {offsets = [0, 4], sizes = [8, 4], strides = [1, 1]} : vector<8x16xbf16> to vector<8x4xbf16>
    %47 = vector.extract_strided_slice %7 {offsets = [0, 4], sizes = [8, 4], strides = [1, 1]} : vector<8x16xbf16> to vector<8x4xbf16>
    %cst_13 = arith.constant dense<0.000000e+00> : vector<8x8xf32>
    %48 = tpu.matmul %46, %47, %cst_13 {dimension_numbers = #tpu.dot_dimension_numbers<[1], [1], [0], [0], [0, 0, 1, 0], [], []>} : vector<8x4xbf16>, vector<8x4xbf16>, vector<8x8xf32> -> vector<8x8xf32>
    %cst_14 = arith.constant dense<0xFF800000> : vector<8xf32>
    %49 = vector.multi_reduction <maximumf>, %45, %cst_14 [1] : vector<8x8xf32> to vector<8xf32>
    %50 = vector.shape_cast %49 : vector<8xf32> to vector<8x1xf32>
    %51 = vector.broadcast %50 : vector<8x1xf32> to vector<8x8xf32>
    %52 = arith.subf %45, %51 : vector<8x8xf32>
    %53 = math.exp %52 : vector<8x8xf32>
    %cst_15 = arith.constant dense<0.000000e+00> : vector<8xf32>
    %54 = vector.multi_reduction <add>, %53, %cst_15 [1] : vector<8x8xf32> to vector<8xf32>
    %55 = vector.shape_cast %54 : vector<8xf32> to vector<8x1xf32>
    %56 = tpu.reciprocal %55 {approx = true} : vector<8x1xf32> -> vector<8x1xf32>
    %57 = vector.broadcast %56 : vector<8x1xf32> to vector<8x8xf32>
    %58 = arith.mulf %53, %57 : vector<8x8xf32>
    %cst_16 = arith.constant dense<0xFF800000> : vector<8xf32>
    %59 = vector.multi_reduction <maximumf>, %48, %cst_16 [1] : vector<8x8xf32> to vector<8xf32>
    %60 = vector.shape_cast %59 : vector<8xf32> to vector<8x1xf32>
    %61 = vector.broadcast %60 : vector<8x1xf32> to vector<8x8xf32>
    %62 = arith.subf %48, %61 : vector<8x8xf32>
    %63 = math.exp %62 : vector<8x8xf32>
    %cst_17 = arith.constant dense<0.000000e+00> : vector<8xf32>
    %64 = vector.multi_reduction <add>, %63, %cst_17 [1] : vector<8x8xf32> to vector<8xf32>
    %65 = vector.shape_cast %64 : vector<8xf32> to vector<8x1xf32>
    %66 = tpu.reciprocal %65 {approx = true} : vector<8x1xf32> -> vector<8x1xf32>
    %67 = vector.broadcast %66 : vector<8x1xf32> to vector<8x8xf32>
    %68 = arith.mulf %63, %67 : vector<8x8xf32>
    %69 = arith.addf %58, %68 : vector<8x8xf32>
    %70 = arith.truncf %69 : vector<8x8xf32> to vector<8x8xbf16>
    %71 = vector.extract_strided_slice %9 {offsets = [0, 4], sizes = [8, 4], strides = [1, 1]} : vector<8x16xbf16> to vector<8x4xbf16>
    %cst_18 = arith.constant dense<0.000000e+00> : vector<8x4xf32>
    %72 = tpu.matmul %70, %71, %cst_18 {dimension_numbers = #tpu.dot_dimension_numbers<[1], [0], [0], [1], [0, 0, 1, 1], [], []>} : vector<8x8xbf16>, vector<8x4xbf16>, vector<8x4xf32> -> vector<8x4xf32>
    %73 = vector.extract_strided_slice %5 {offsets = [0, 8], sizes = [8, 4], strides = [1, 1]} : vector<8x16xbf16> to vector<8x4xbf16>
    %74 = vector.extract_strided_slice %12 {offsets = [0, 8], sizes = [8, 4], strides = [1, 1]} : vector<8x16xbf16> to vector<8x4xbf16>
    %cst_19 = arith.constant dense<0.000000e+00> : vector<8x8xf32>
    %75 = tpu.matmul %73, %74, %cst_19 {dimension_numbers = #tpu.dot_dimension_numbers<[1], [1], [0], [0], [0, 0, 1, 0], [], []>} : vector<8x4xbf16>, vector<8x4xbf16>, vector<8x8xf32> -> vector<8x8xf32>
    %76 = vector.extract_strided_slice %5 {offsets = [0, 8], sizes = [8, 4], strides = [1, 1]} : vector<8x16xbf16> to vector<8x4xbf16>
    %77 = vector.extract_strided_slice %7 {offsets = [0, 8], sizes = [8, 4], strides = [1, 1]} : vector<8x16xbf16> to vector<8x4xbf16>
    %cst_20 = arith.constant dense<0.000000e+00> : vector<8x8xf32>
    %78 = tpu.matmul %76, %77, %cst_20 {dimension_numbers = #tpu.dot_dimension_numbers<[1], [1], [0], [0], [0, 0, 1, 0], [], []>} : vector<8x4xbf16>, vector<8x4xbf16>, vector<8x8xf32> -> vector<8x8xf32>
    %cst_21 = arith.constant dense<0xFF800000> : vector<8xf32>
    %79 = vector.multi_reduction <maximumf>, %75, %cst_21 [1] : vector<8x8xf32> to vector<8xf32>
    %80 = vector.shape_cast %79 : vector<8xf32> to vector<8x1xf32>
    %81 = vector.broadcast %80 : vector<8x1xf32> to vector<8x8xf32>
    %82 = arith.subf %75, %81 : vector<8x8xf32>
    %83 = math.exp %82 : vector<8x8xf32>
    %cst_22 = arith.constant dense<0.000000e+00> : vector<8xf32>
    %84 = vector.multi_reduction <add>, %83, %cst_22 [1] : vector<8x8xf32> to vector<8xf32>
    %85 = vector.shape_cast %84 : vector<8xf32> to vector<8x1xf32>
    %86 = tpu.reciprocal %85 {approx = true} : vector<8x1xf32> -> vector<8x1xf32>
    %87 = vector.broadcast %86 : vector<8x1xf32> to vector<8x8xf32>
    %88 = arith.mulf %83, %87 : vector<8x8xf32>
    %cst_23 = arith.constant dense<0xFF800000> : vector<8xf32>
    %89 = vector.multi_reduction <maximumf>, %78, %cst_23 [1] : vector<8x8xf32> to vector<8xf32>
    %90 = vector.shape_cast %89 : vector<8xf32> to vector<8x1xf32>
    %91 = vector.broadcast %90 : vector<8x1xf32> to vector<8x8xf32>
    %92 = arith.subf %78, %91 : vector<8x8xf32>
    %93 = math.exp %92 : vector<8x8xf32>
    %cst_24 = arith.constant dense<0.000000e+00> : vector<8xf32>
    %94 = vector.multi_reduction <add>, %93, %cst_24 [1] : vector<8x8xf32> to vector<8xf32>
    %95 = vector.shape_cast %94 : vector<8xf32> to vector<8x1xf32>
    %96 = tpu.reciprocal %95 {approx = true} : vector<8x1xf32> -> vector<8x1xf32>
    %97 = vector.broadcast %96 : vector<8x1xf32> to vector<8x8xf32>
    %98 = arith.mulf %93, %97 : vector<8x8xf32>
    %99 = arith.addf %88, %98 : vector<8x8xf32>
    %100 = arith.truncf %99 : vector<8x8xf32> to vector<8x8xbf16>
    %101 = vector.extract_strided_slice %9 {offsets = [0, 8], sizes = [8, 4], strides = [1, 1]} : vector<8x16xbf16> to vector<8x4xbf16>
    %cst_25 = arith.constant dense<0.000000e+00> : vector<8x4xf32>
    %102 = tpu.matmul %100, %101, %cst_25 {dimension_numbers = #tpu.dot_dimension_numbers<[1], [0], [0], [1], [0, 0, 1, 1], [], []>} : vector<8x8xbf16>, vector<8x4xbf16>, vector<8x4xf32> -> vector<8x4xf32>
    %103 = vector.extract_strided_slice %5 {offsets = [0, 12], sizes = [8, 4], strides = [1, 1]} : vector<8x16xbf16> to vector<8x4xbf16>
    %104 = vector.extract_strided_slice %12 {offsets = [0, 12], sizes = [8, 4], strides = [1, 1]} : vector<8x16xbf16> to vector<8x4xbf16>
    %cst_26 = arith.constant dense<0.000000e+00> : vector<8x8xf32>
    %105 = tpu.matmul %103, %104, %cst_26 {dimension_numbers = #tpu.dot_dimension_numbers<[1], [1], [0], [0], [0, 0, 1, 0], [], []>} : vector<8x4xbf16>, vector<8x4xbf16>, vector<8x8xf32> -> vector<8x8xf32>
    %106 = vector.extract_strided_slice %5 {offsets = [0, 12], sizes = [8, 4], strides = [1, 1]} : vector<8x16xbf16> to vector<8x4xbf16>
    %107 = vector.extract_strided_slice %7 {offsets = [0, 12], sizes = [8, 4], strides = [1, 1]} : vector<8x16xbf16> to vector<8x4xbf16>
    %cst_27 = arith.constant dense<0.000000e+00> : vector<8x8xf32>
    %108 = tpu.matmul %106, %107, %cst_27 {dimension_numbers = #tpu.dot_dimension_numbers<[1], [1], [0], [0], [0, 0, 1, 0], [], []>} : vector<8x4xbf16>, vector<8x4xbf16>, vector<8x8xf32> -> vector<8x8xf32>
    %cst_28 = arith.constant dense<0xFF800000> : vector<8xf32>
    %109 = vector.multi_reduction <maximumf>, %105, %cst_28 [1] : vector<8x8xf32> to vector<8xf32>
    %110 = vector.shape_cast %109 : vector<8xf32> to vector<8x1xf32>
    %111 = vector.broadcast %110 : vector<8x1xf32> to vector<8x8xf32>
    %112 = arith.subf %105, %111 : vector<8x8xf32>
    %113 = math.exp %112 : vector<8x8xf32>
    %cst_29 = arith.constant dense<0.000000e+00> : vector<8xf32>
    %114 = vector.multi_reduction <add>, %113, %cst_29 [1] : vector<8x8xf32> to vector<8xf32>
    %115 = vector.shape_cast %114 : vector<8xf32> to vector<8x1xf32>
    %116 = tpu.reciprocal %115 {approx = true} : vector<8x1xf32> -> vector<8x1xf32>
    %117 = vector.broadcast %116 : vector<8x1xf32> to vector<8x8xf32>
    %118 = arith.mulf %113, %117 : vector<8x8xf32>
    %cst_30 = arith.constant dense<0xFF800000> : vector<8xf32>
    %119 = vector.multi_reduction <maximumf>, %108, %cst_30 [1] : vector<8x8xf32> to vector<8xf32>
    %120 = vector.shape_cast %119 : vector<8xf32> to vector<8x1xf32>
    %121 = vector.broadcast %120 : vector<8x1xf32> to vector<8x8xf32>
    %122 = arith.subf %108, %121 : vector<8x8xf32>
    %123 = math.exp %122 : vector<8x8xf32>
    %cst_31 = arith.constant dense<0.000000e+00> : vector<8xf32>
    %124 = vector.multi_reduction <add>, %123, %cst_31 [1] : vector<8x8xf32> to vector<8xf32>
    %125 = vector.shape_cast %124 : vector<8xf32> to vector<8x1xf32>
    %126 = tpu.reciprocal %125 {approx = true} : vector<8x1xf32> -> vector<8x1xf32>
    %127 = vector.broadcast %126 : vector<8x1xf32> to vector<8x8xf32>
    %128 = arith.mulf %123, %127 : vector<8x8xf32>
    %129 = arith.addf %118, %128 : vector<8x8xf32>
    %130 = arith.truncf %129 : vector<8x8xf32> to vector<8x8xbf16>
    %131 = vector.extract_strided_slice %9 {offsets = [0, 12], sizes = [8, 4], strides = [1, 1]} : vector<8x16xbf16> to vector<8x4xbf16>
    %cst_32 = arith.constant dense<0.000000e+00> : vector<8x4xf32>
    %132 = tpu.matmul %130, %131, %cst_32 {dimension_numbers = #tpu.dot_dimension_numbers<[1], [0], [0], [1], [0, 0, 1, 1], [], []>} : vector<8x8xbf16>, vector<8x4xbf16>, vector<8x4xf32> -> vector<8x4xf32>
    %133 = tpu.concatenate %42, %72, %102, %132 in 1 : vector<8x4xf32>, vector<8x4xf32>, vector<8x4xf32>, vector<8x4xf32> -> vector<8x16xf32>
    %c0_33 = arith.constant 0 : index
    %c0_34 = arith.constant 0 : index
    %c0_35 = arith.constant 0 : index
    %134 = vector.load %arg3[%c0_33, %c0_34, %c0_35] : memref<1x8x16xf32, #tpu.memory_space<vmem>>, vector<1x8x16xf32>
    %135 = vector.shape_cast %134 : vector<1x8x16xf32> to vector<8x16xf32>
    %136 = vector.shape_cast %133 : vector<8x16xf32> to vector<1x8x16xf32>
    tpu.vector_store %arg3[%c0_33, %c0_34, %c0_35], %136 {strides = array<i32>} : memref<1x8x16xf32, #tpu.memory_space<vmem>>, vector<1x8x16xf32>,
    return
  }
  func.func @transform_0(%arg0: i32) -> (i32, i32, i32) {
    %c0_i32 = arith.constant 0 : i32
    %c0_i32_0 = arith.constant 0 : i32
    %c0_i32_1 = arith.constant 0 : i32
    return %arg0, %c0_i32, %c0_i32_0 : i32, i32, i32
  }
  func.func @transform_1(%arg0: i32) -> (i32, i32, i32) {
    %c0_i32 = arith.constant 0 : i32
    %c0_i32_0 = arith.constant 0 : i32
    %c0_i32_1 = arith.constant 0 : i32
    return %arg0, %c0_i32, %c0_i32_0 : i32, i32, i32
  }
  func.func @transform_2(%arg0: i32) -> (i32, i32, i32) {
    %c0_i32 = arith.constant 0 : i32
    %c0_i32_0 = arith.constant 0 : i32
    %c0_i32_1 = arith.constant 0 : i32
    return %arg0, %c0_i32, %c0_i32_0 : i32, i32, i32
  }
}

</mosaic_0001>

<bundles_post_ra>
// kernel: transformer_encoder.9
= control target key start
LH: loop header
LB: loop body
LE: loop exit
PB: predicated region body
PF: predicated region fallthrough
CT: control target
= control target key end

     0   :  { %vm16_vm0 = vcmask 130048   ;;  %s118_s0 = inlined_call_operand.vmem [shape: f32[16,16], index: 0, kind: input, shape index: {}]   ;;  %s119_s1 = inlined_call_operand.vmem [shape: f32[1,16], index: 1, kind: input, shape index: {}]   ;;  %s120_s2 = inlined_call_operand.vmem [shape: f32[1,16], index: 2, kind: input, shape index: {}]   ;;  %s121_s3 = inlined_call_operand.vmem [shape: f32[16,16], index: 3, kind: output, shape index: {}]  }
   0x1   :  { %v14_v0 = vld [vmem:[%s118_s0] sm:$0xff]  ;;  %v15_v1 = vld [vmem:[%s118_s0 + $0x8] sm:$0xff] }
   0x2   :  { %v17_v2 = vsel %vm16_vm0, %v14_v0, 0.0  ;;  %v20_v3 = vsel %vm16_vm0, %v15_v1, 0.0  ;;  %v68_v21 = vld [vmem:[%s119_s1] ss:$0 sm:$0xff] }
   0x3   :  { %18 = vadd.xlane.f32.xlu0 %v17_v2  ;;  %v69_v23 = vld [vmem:[%s120_s2] ss:$0 sm:$0xff] }
   0x7   :  { %21 = vadd.xlane.f32.xlu0 %v20_v3 }
  0x90   :  { %v19_v4 = vpop.xlane.xlu0 %18 }
  0x91   :  { %v24_v5 = vmul.f32 0.0625, %v19_v4 }
  0x93   :  { %v26_v6 = vsub.f32 %v14_v0, %v24_v5 }
  0x94   :  { %v22_v7 = vpop.xlane.xlu0 %21 }
  0x95   :  { %v25_v8 = vmul.f32 0.0625, %v22_v7  ;;  %v28_v9 = vmul.f32 %v26_v6, %v26_v6 }
  0x97   :  { %v27_v10 = vsub.f32 %v15_v1, %v25_v8  ;;  %v30_v11 = vsel %vm16_vm0, %v28_v9, 0.0 }
  0x98   :  { %31 = vadd.xlane.f32.xlu1 %v30_v11 }
  0x99   :  { %v29_v12 = vmul.f32 %v27_v10, %v27_v10 }
  0x9b   :  { %v33_v13 = vsel %vm16_vm0, %v29_v12, 0.0 }
  0x9c   :  { %34 = vadd.xlane.f32.xlu1 %v33_v13 }
 0x125   :  { %v32_v14 = vpop.xlane.xlu1 %31 }
 0x126   :  { %v36_v15 = vmul.f32 0.0625, %v32_v14 }
 0x128   :  { %v38_v16 = vadd.f32 1e-05, %v36_v15 }
 0x129   :  { %v35_v17 = vpop.xlane.xlu1 %34 }
 0x12a   :  { %70 = vrsqrt.f32 %v38_v16  ;;  %v37_v18 = vmul.f32 0.0625, %v35_v17 }
 0x12c   :  { %v39_v19 = vadd.f32 1e-05, %v37_v18 }
 0x12e   :  { %72 = vrsqrt.f32 %v39_v19 }
 0x134   :  { %v71_v20 = vpop.eup %70 }
 0x135   :  { %v42_v22 = vmul.f32 %v71_v20, %v26_v6 }
 0x137   :  { %v51_v24 = vmul.f32 %v68_v21, %v42_v22 }
 0x138   :  { %v73_v25 = vpop.eup %72 }
 0x139   :  { %v60_v26 = vadd.f32 %v69_v23, %v51_v24  ;;  %v43_v27 = vmul.f32 %v73_v25, %v27_v10 }
 0x13b   :  { %62 = vst.msk [vmem:[%s121_s3] sm:$0xff] %vm16_vm0, %v60_v26  ;;  %v52_v28 = vmul.f32 %v68_v21, %v43_v27 }
 0x13d   :  { %v61_v29 = vadd.f32 %v69_v23, %v52_v28 }
 0x13f   :  { %63 = vst.msk [vmem:[%s121_s3 + $0x8] sm:$0xff] %vm16_vm0, %v61_v29 }

// kernel: transformer_encoder.11
= control target key start
LH: loop header
LB: loop body
LE: loop exit
PB: predicated region body
PF: predicated region fallthrough
CT: control target
= control target key end

     0   :  { %vm19_vm0 = vcmask 392192   ;;  %v119_v0 = vmov 0.0   ;;  %vm120_vm1 = vmmov 0   ;;  %vm35_vm2 = vcmask 130048   ;;  %s165_s1 = inlined_call_operand.vmem [shape: bf16[16,48], index: 1, kind: input, shape index: {}]   ;;  %s166_s0 = inlined_call_operand.vmem [shape: f32[16,16], index: 0, kind: input, shape index: {}]   ;;  %s167_s2 = inlined_call_operand.vmem [shape: f32[1,48], index: 2, kind: input, shape index: {}]   ;;  %s168_s3 = inlined_call_operand.vmem [shape: f32[16,48], index: 3, kind: output, shape index: {}]  }
   0x1   :  { %20 = vst.msk [vmem:[#allocation2] sm:$0xff] %vm19_vm0, %v119_v0  ;;  %21 = vst.msk [vmem:[#allocation2 + $0x8] sm:$0xff] %vm19_vm0, %v119_v0  ;;  %110 = vmatprep.subr.bf16.mxu0 %v119_v0  ;;  %v118_v1 = vld [vmem:[%s165_s1] sm:$0xff]   ;;  %112 = vmatprep.mubr.msk.bf16.mxu0 %vm120_vm1, %v119_v0  ;;  %v25_v3 = vld [vmem:[%s166_s0 + $0x8] sm:$0xff] }
   0x2   :  { %v24_v2 = vld [vmem:[%s166_s0] sm:$0xff]  ;;  %111 = vmatpush3.bf16.msra.mxu0 %v118_v1 }
   0x3   :  { %v26_v4 = vpack.c.bf16 %v25_v3, %v24_v2  ;;  %v107_v13 = vld [vmem:[%s167_s2] ss:$0 sm:$0xff] }
   0x5   :  { %113 = vmatmul.mubr.msk.bf16.vlgmr.msra.gmra.mrb[0].mxu0 %vm35_vm2, %v26_v4 }
   0x8   :  { %v22_v5 = vld [vmem:[#allocation2] sm:$0xff]  ;;  %v23_v7 = vld [vmem:[#allocation2 + $0x8] sm:$0xff] }
  0xd8   :  { %v73_v6 = vpop.f32.mrb[0].mxu0 }
  0xd9   :  { %v80_v8 = vadd.f32 %v73_v6, %v22_v5  ;;  %v114_v9 = vpop.f32.mrb[1].mxu0 }
  0xda   :  { %v76_v10 = vpop.f32.mrb[2].mxu0 }
  0xdb   :  { %83 = vst.msk [vmem:[#allocation2] sm:$0xff] %vm19_vm0, %v80_v8  ;;  %v81_v11 = vadd.f32 %v76_v10, %v23_v7  ;;  %v115_v12 = vpop.f32.mrb[3].mxu0 }
  0xdd   :  { %84 = vst.msk [vmem:[#allocation2 + $0x8] sm:$0xff] %vm19_vm0, %v81_v11 }
  0xe2   :  { %v88_v14 = vld [vmem:[#allocation2] sm:$0xff] }
  0xe3   :  { %v97_v15 = vadd.f32 %v107_v13, %v88_v14 }
  0xe4   :  { %v89_v16 = vld [vmem:[#allocation2 + $0x8] sm:$0xff] }
  0xe5   :  { %99 = vst.msk [vmem:[%s168_s3] sm:$0xff] %vm19_vm0, %v97_v15  ;;  %v98_v17 = vadd.f32 %v107_v13, %v89_v16 }
  0xe7   :  { %100 = vst.msk [vmem:[%s168_s3 + $0x8] sm:$0xff] %vm19_vm0, %v98_v17 }

// kernel: transformer_encoder.10
= control target key start
LH: loop header
LB: loop body
LE: loop exit
PB: predicated region body
PF: predicated region fallthrough
CT: control target
= control target key end

     0   :  { %s626_s12 = smov 0   ;;  %s675_s0 = inlined_call_operand.vmem [shape: f32[2,12,16], index: 0, kind: input, shape index: {}]   ;;  %s676_s1 = inlined_call_operand.vmem [shape: bf16[5,16,32], index: 1, kind: input, shape index: {}]   ;;  %s677_s2 = inlined_call_operand.vmem [shape: f32[1,32], index: 2, kind: input, shape index: {}]   ;;  %s678_s3 = inlined_call_operand.vmem [shape: f32[2,8,32], index: 3, kind: output, shape index: {}]  }
   0x1 LB: > { %s511_s13 = sadd.s32 4294967295, %s602_s12   ;;  %p515_p0 = scmp.ge.s32.totalorder %s602_s12, 1  ;;  %s602_s12 = sphi %s626_s12, %s13_s12  }
   0x2   : > { %p137_p1 = scmp.lt.s32.totalorder %s602_s12, 3 }
   0x4   : > { %p138_p2 = pnand %p515_p0, %p137_p1 }
   0x5   : > { %v591_v0 = vld [vmem:[%s676_s1 + $0x8] sm:$0xff] (!%p138_p2)   ;;  %v604_v1 = vmov (!%p138_p2), 0.0   ;;  %v592_v2 = vld [vmem:[%s676_s1] sm:$0xff] (!%p138_p2)   ;;  %vm605_vm0 = vmmov (!%p138_p2), 0   ;;  %p160_p3 = scmp.lt.s32.totalorder (!%p138_p2), %s511_s13, 1  ;;  %vm191_vm1 = vcmask (!%p138_p2), 130048  }
   0x6   : > { %141 = sbr.rel (%p138_p2) target bundleno = 258 (0x102), region = 32  ;;  %551 = vmatprep.subr.bf16.mxu0 (!%p138_p2), %v604_v1  ;;  %557 = vmatprep.subr.bf16.mxu1 (!%p138_p2), %v604_v1  ;;  %v594_v5 = vld [vmem:[%s676_s1 + $0x18] sm:$0xff] (!%p138_p2)   ;;  %v593_v12 = vld [vmem:[%s676_s1 + $0x10] sm:$0xff] (!%p138_p2)   ;;  %v595_v16 = vld [vmem:[%s676_s1 + $0x20] sm:$0xff] (!%p138_p2)   ;;  %vm456_vm2 = vcmask (!%p138_p2), 261120  }
   0x7   : > { %552 = vmatpush3.bf16.msra.mxu0 (!%p138_p2), %v591_v0  ;;  %553 = vmatprep.mubr.msk.bf16.mxu0 (!%p138_p2), %vm605_vm0, %v604_v1  ;;  %v537_v38 = vld [vmem:[%s677_s2] ss:$0 sm:$0xff] (!%p138_p2) }
   0x8   : > { %558 = vmatpush3.bf16.msra.mxu1 (!%p138_p2), %v592_v2  ;;  %559 = vmatprep.mubr.msk.bf16.mxu1 (!%p138_p2), %vm605_vm0, %v604_v1 }
   0x9   : > { %563 = vmatprep.subr.bf16.mxu0 (!%p138_p2), %v604_v1  ;;  %569 = vmatprep.subr.bf16.mxu1 (!%p138_p2), %v604_v1 }
   0xd   : > { %s680_s13 = smov (!%p160_p3, %s511_s13), 1 }
   0xe   : > { %s540_s18 = sshll.u32 %s680_s13, 4  ;;  %s518_s28 = sshll.u32 %s680_s13, 3 }
   0xf   : > { %s164_s21 = scalar_lea.vmem %s675_s0, %s540_s18  ;;  %s168_s6 = scalar_lea.vmem %s678_s3, %s518_s28 }
  0x10   : > { %v170_v3 = vld [vmem:[%s164_s21] sm:$0xff]  ;;  %v171_v4 = vld [vmem:[%s164_s21 + $0x8] sm:$0xf] }
  0x11   : > { %v172_v6 = vpack.c.bf16 %v171_v4, %v170_v3 }
  0x13   : > { %v179_v7 = vshrl.u32 %v172_v6, 16  ;;  %v181_v8 = vshll.u32 %v172_v6, 16  ;;  %560 = vmatmul.mubr.msk.bf16.vlgmr.msra.gmra.mrb[0].mxu1 %vm191_vm1, %v172_v6  ;;  %v287_v15 = vrot.slane %v172_v6, 1  ;;  %v397_v17 = vrot.slane %v172_v6, 2 }
  0x14   : > { %570 = vmatpush3.bf16.msra.mxu1 %v594_v5  ;;  %571 = vmatprep.mubr.msk.bf16.mxu1 %vm605_vm0, %v604_v1 }
  0x15   : > { %v183_v9 = vrot.slane %v181_v8, 1  ;;  %v341_v10 = vrot.slane %v179_v7, 1  ;;  %v342_v11 = vrot.slane %v181_v8, 2 }
  0x17   : > { %v184_v13 = vor.u32 %v183_v9, %v179_v7  ;;  %v343_v14 = vor.u32 %v342_v11, %v341_v10 }
  0x19   : > { %554 = vmatmul.mubr.msk.bf16.vlgmr.msra.gmra.mrb[0].mxu0 %vm191_vm1, %v184_v13 }
  0x1a   : > { %564 = vmatpush3.bf16.msra.mxu0 %v593_v12  ;;  %565 = vmatprep.mubr.msk.bf16.mxu0 %vm605_vm0, %v604_v1 }
  0x1b   : > { %575 = vmatprep.subr.bf16.mxu0 %v604_v1  ;;  %572 = vmatmul.mubr.msk.bf16.vlgmr.msra.gmra.mrb[4].mxu1 %vm191_vm1, %v343_v14 }
  0x21   : > { %566 = vmatmul.mubr.msk.bf16.vlgmr.msra.gmra.mrb[4].mxu0 %vm191_vm1, %v287_v15 }
  0x22   : > { %576 = vmatpush3.bf16.msra.mxu0 %v595_v16  ;;  %577 = vmatprep.mubr.msk.bf16.mxu0 %vm605_vm0, %v604_v1 }
  0x29   : > { %578 = vmatmul.mubr.msk.bf16.vlgmr.msra.gmra.mrb[8].mxu0 %vm191_vm1, %v397_v17 }
  0xe6   : > { %v277_v18 = vpop.f32.mrb[0].mxu1 }
  0xe7   : > { %v561_v19 = vpop.f32.mrb[1].mxu1 }
  0xe8   : > { %v280_v20 = vpop.f32.mrb[2].mxu1 }
  0xe9   : > { %v562_v21 = vpop.f32.mrb[3].mxu1 }
  0xec   : > { %v229_v22 = vpop.f32.mrb[0].mxu0 }
  0xed   : > { %v278_v23 = vadd.f32 %v277_v18, %v229_v22  ;;  %v555_v24 = vpop.f32.mrb[1].mxu0 }
  0xee   : > { %v232_v25 = vpop.f32.mrb[2].mxu0  ;;  %v387_v26 = vpop.f32.mrb[4].mxu1 }
  0xef   : > { %v556_v27 = vpop.f32.mrb[3].mxu0  ;;  %v573_v28 = vpop.f32.mrb[5].mxu1 }
  0xf0   : > { %v390_v29 = vpop.f32.mrb[6].mxu1 }
  0xf1   : > { %v574_v30 = vpop.f32.mrb[7].mxu1 }
  0xf4   : > { %v331_v31 = vpop.f32.mrb[4].mxu0 }
  0xf5   : > { %v337_v32 = vadd.f32 %v331_v31, %v278_v23  ;;  %v567_v33 = vpop.f32.mrb[5].mxu0 }
  0xf6   : > { %v334_v34 = vpop.f32.mrb[6].mxu0 }
  0xf7   : > { %v393_v35 = vadd.f32 %v387_v26, %v337_v32  ;;  %v568_v36 = vpop.f32.mrb[7].mxu0 }
  0xfc   : > { %v441_v37 = vpop.f32.mrb[8].mxu0 }
  0xfd   : > { %v447_v39 = vadd.f32 %v441_v37, %v393_v35  ;;  %v579_v40 = vpop.f32.mrb[9].mxu0 }
  0xfe   : > { %v444_v41 = vpop.f32.mrb[10].mxu0 }
  0xff   : > { %v455_v42 = vadd.f32 %v537_v38, %v447_v39  ;;  %v580_v43 = vpop.f32.mrb[11].mxu0 }
 0x101   : > { %457 = vst.msk [vmem:[%s168_s6] sm:$0xff] %vm456_vm2, %v455_v42 }
 0x102 PF: > { %s13_s12 = sadd.s32 1, %s602_s12  }
 0x103   : > { %p10_p4 = scmp.ge.s32.totalorder %s13_s12, 4  }
 0x105   :  { %12 = sbr.rel (!%p10_p4) target bundleno = 1 (0x1), region = 66 }

// kernel: transformer_encoder.12
= control target key start
LH: loop header
LB: loop body
LE: loop exit
PB: predicated region body
PF: predicated region fallthrough
CT: control target
= control target key end

     0   :  { %vm19_vm0 = vcmask 130048   ;;  %v132_v0 = vmov 0.0   ;;  %vm133_vm1 = vmmov 0   ;;  %vm43_vm2 = vcmask 261120   ;;  %s181_s1 = inlined_call_operand.vmem [shape: bf16[32,16], index: 1, kind: input, shape index: {}]   ;;  %s182_s0 = inlined_call_operand.vmem [shape: f32[16,32], index: 0, kind: input, shape index: {}]   ;;  %s183_s2 = inlined_call_operand.vmem [shape: f32[1,16], index: 2, kind: input, shape index: {}]   ;;  %s184_s3 = inlined_call_operand.vmem [shape: f32[16,16], index: 3, kind: output, shape index: {}]  }
   0x1   :  { %120 = vmatprep.subr.bf16.mxu0 %v132_v0  ;;  %v130_v1 = vld [vmem:[%s181_s1] sm:$0xff]   ;;  %124 = vmatprep.mubr.msk.bf16.mxu0 %vm133_vm1, %v132_v0  ;;  %20 = vst.msk [vmem:[#allocation2] sm:$0xff] %vm19_vm0, %v132_v0  ;;  %21 = vst.msk [vmem:[#allocation2 + $0x8] sm:$0xff] %vm19_vm0, %v132_v0  ;;  %v131_v2 = vld [vmem:[%s181_s1 + $0x8] sm:$0xff]  }
   0x2   :  { %121 = vmatpush3.bf16.msra.mxu0 %v130_v1  ;;  %v24_v3 = vld [vmem:[%s182_s0] sm:$0xff]  ;;  %v25_v4 = vld [vmem:[%s182_s0 + $0x8] sm:$0xff] }
   0x3   :  { %122 = vmatprep.subr.bf16.mxu0 %v132_v0  ;;  %v26_v5 = vpack.c.bf16 %v25_v4, %v24_v3  ;;  %v116_v14 = vld [vmem:[%s183_s2] ss:$0 sm:$0xff] }
   0x6   :  { %123 = vmatpush3.bf16.msra.mxu0 %v131_v2 }
   0x8   :  { %v22_v6 = vld [vmem:[#allocation2] sm:$0xff]  ;;  %v23_v8 = vld [vmem:[#allocation2 + $0x8] sm:$0xff] }
   0x9   :  { %125 = vmatmul.mubr.msk.bf16.vlgmr.msra.gmra.mrb[0].mxu0 %vm43_vm2, %v26_v5 }
  0xdc   :  { %v81_v7 = vpop.f32.mrb[0].mxu0 }
  0xdd   :  { %v88_v9 = vadd.f32 %v81_v7, %v22_v6  ;;  %v126_v10 = vpop.f32.mrb[1].mxu0 }
  0xde   :  { %v84_v11 = vpop.f32.mrb[2].mxu0 }
  0xdf   :  { %91 = vst.msk [vmem:[#allocation2] sm:$0xff] %vm19_vm0, %v88_v9  ;;  %v89_v12 = vadd.f32 %v84_v11, %v23_v8  ;;  %v127_v13 = vpop.f32.mrb[3].mxu0 }
  0xe1   :  { %92 = vst.msk [vmem:[#allocation2 + $0x8] sm:$0xff] %vm19_vm0, %v89_v12 }
  0xe6   :  { %v96_v15 = vld [vmem:[#allocation2] sm:$0xff] }
  0xe7   :  { %v105_v16 = vadd.f32 %v116_v14, %v96_v15 }
  0xe8   :  { %v97_v17 = vld [vmem:[#allocation2 + $0x8] sm:$0xff] }
  0xe9   :  { %107 = vst.msk [vmem:[%s184_s3] sm:$0xff] %vm19_vm0, %v105_v16  ;;  %v106_v18 = vadd.f32 %v116_v14, %v97_v17 }
  0xeb   :  { %108 = vst.msk [vmem:[%s184_s3 + $0x8] sm:$0xff] %vm19_vm0, %v106_v18 }

// kernel: transformer_encoder.14
= control target key start
LH: loop header
LB: loop body
LE: loop exit
PB: predicated region body
PF: predicated region fallthrough
CT: control target
= control target key end

     0   :  { %vm22_vm0 = vcmask 130048   ;;  %v125_v0 = vmov 0.0   ;;  %vm126_vm1 = vmmov 0   ;;  %s183_s1 = inlined_call_operand.vmem [shape: bf16[16,16], index: 1, kind: input, shape index: {}]   ;;  %s184_s0 = inlined_call_operand.vmem [shape: f32[16,16], index: 0, kind: input, shape index: {}]   ;;  %s185_s2 = inlined_call_operand.vmem [shape: f32[1,16], index: 2, kind: input, shape index: {}]   ;;  %s186_s3 = inlined_call_operand.vmem [shape: f32[16,16], index: 3, kind: input, shape index: {}]   ;;  %s187_s4 = inlined_call_operand.vmem [shape: f32[16,16], index: 4, kind: output, shape index: {}]  }
   0x1   :  { %23 = vst.msk [vmem:[#allocation2] sm:$0xff] %vm22_vm0, %v125_v0  ;;  %24 = vst.msk [vmem:[#allocation2 + $0x8] sm:$0xff] %vm22_vm0, %v125_v0  ;;  %116 = vmatprep.subr.bf16.mxu0 %v125_v0  ;;  %v124_v1 = vld [vmem:[%s183_s1] sm:$0xff]   ;;  %118 = vmatprep.mubr.msk.bf16.mxu0 %vm126_vm1, %v125_v0  ;;  %v28_v3 = vld [vmem:[%s184_s0 + $0x8] sm:$0xff] }
   0x2   :  { %v27_v2 = vld [vmem:[%s184_s0] sm:$0xff]  ;;  %117 = vmatpush3.bf16.msra.mxu0 %v124_v1  ;;  %v102_v18 = vld [vmem:[%s186_s3 + $0x8] sm:$0xff] }
   0x3   :  { %v29_v4 = vpack.c.bf16 %v28_v3, %v27_v2  ;;  %v113_v13 = vld [vmem:[%s185_s2] ss:$0 sm:$0xff] }
   0x4   :  { %v101_v15 = vld [vmem:[%s186_s3] sm:$0xff] }
   0x5   :  { %119 = vmatmul.mubr.msk.bf16.vlgmr.msra.gmra.mrb[0].mxu0 %vm22_vm0, %v29_v4 }
   0x8   :  { %v25_v5 = vld [vmem:[#allocation2] sm:$0xff]  ;;  %v26_v7 = vld [vmem:[#allocation2 + $0x8] sm:$0xff] }
  0xd8   :  { %v76_v6 = vpop.f32.mrb[0].mxu0 }
  0xd9   :  { %v83_v8 = vadd.f32 %v76_v6, %v25_v5  ;;  %v120_v9 = vpop.f32.mrb[1].mxu0 }
  0xda   :  { %v79_v10 = vpop.f32.mrb[2].mxu0 }
  0xdb   :  { %85 = vst.msk [vmem:[#allocation2] sm:$0xff] %vm22_vm0, %v83_v8  ;;  %v84_v11 = vadd.f32 %v79_v10, %v26_v7  ;;  %v121_v12 = vpop.f32.mrb[3].mxu0 }
  0xdd   :  { %86 = vst.msk [vmem:[#allocation2 + $0x8] sm:$0xff] %vm22_vm0, %v84_v11 }
  0xe2   :  { %v90_v14 = vld [vmem:[#allocation2] sm:$0xff] }
  0xe3   :  { %v99_v16 = vadd.f32 %v113_v13, %v90_v14 }
  0xe4   :  { %v91_v17 = vld [vmem:[#allocation2 + $0x8] sm:$0xff] }
  0xe5   :  { %v103_v19 = vadd.f32 %v101_v15, %v99_v16  ;;  %v100_v20 = vadd.f32 %v113_v13, %v91_v17 }
  0xe7   :  { %105 = vst.msk [vmem:[%s187_s4] sm:$0xff] %vm22_vm0, %v103_v19  ;;  %v104_v21 = vadd.f32 %v102_v18, %v100_v20 }
  0xe9   :  { %106 = vst.msk [vmem:[%s187_s4 + $0x8] sm:$0xff] %vm22_vm0, %v104_v21 }

// kernel: transformer_encoder.16
= control target key start
LH: loop header
LB: loop body
LE: loop exit
PB: predicated region body
PF: predicated region fallthrough
CT: control target
= control target key end

     0   :  { %vm19_vm0 = vcmask 261120   ;;  %v181_v0 = vmov 0.0   ;;  %vm182_vm1 = vmmov 0   ;;  %vm35_vm2 = vcmask 130048   ;;  %s227_s1 = inlined_call_operand.vmem [shape: bf16[16,32], index: 1, kind: input, shape index: {}]   ;;  %s228_s0 = inlined_call_operand.vmem [shape: f32[16,16], index: 0, kind: input, shape index: {}]   ;;  %s229_s2 = inlined_call_operand.vmem [shape: f32[1,32], index: 2, kind: input, shape index: {}]   ;;  %s230_s3 = inlined_call_operand.vmem [shape: f32[16,32], index: 3, kind: output, shape index: {}]  }
   0x1   :  { %20 = vst.msk [vmem:[#allocation2] sm:$0xff] %vm19_vm0, %v181_v0  ;;  %21 = vst.msk [vmem:[#allocation2 + $0x8] sm:$0xff] %vm19_vm0, %v181_v0  ;;  %164 = vmatprep.subr.bf16.mxu0 %v181_v0  ;;  %v172_v1 = vld [vmem:[%s227_s1] sm:$0xff]   ;;  %166 = vmatprep.mubr.msk.bf16.mxu0 %vm182_vm1, %v181_v0  ;;  %v25_v3 = vld [vmem:[%s228_s0 + $0x8] sm:$0xff] }
   0x2   :  { %v24_v2 = vld [vmem:[%s228_s0] sm:$0xff]  ;;  %165 = vmatpush3.bf16.msra.mxu0 %v172_v1 }
   0x3   :  { %v26_v4 = vpack.c.bf16 %v25_v3, %v24_v2  ;;  %v161_v13 = vld [vmem:[%s229_s2] ss:$0 sm:$0xff] }
   0x5   :  { %167 = vmatmul.mubr.msk.bf16.vlgmr.msra.gmra.mrb[0].mxu0 %vm35_vm2, %v26_v4 }
   0x8   :  { %v22_v5 = vld [vmem:[#allocation2] sm:$0xff]  ;;  %v23_v7 = vld [vmem:[#allocation2 + $0x8] sm:$0xff] }
  0xd8   :  { %v73_v6 = vpop.f32.mrb[0].mxu0 }
  0xd9   :  { %v80_v8 = vadd.f32 %v73_v6, %v22_v5  ;;  %v168_v9 = vpop.f32.mrb[1].mxu0 }
  0xda   :  { %v76_v10 = vpop.f32.mrb[2].mxu0 }
  0xdb   :  { %83 = vst.msk [vmem:[#allocation2] sm:$0xff] %vm19_vm0, %v80_v8  ;;  %v81_v11 = vadd.f32 %v76_v10, %v23_v7  ;;  %v169_v12 = vpop.f32.mrb[3].mxu0 }
  0xdd   :  { %84 = vst.msk [vmem:[#allocation2 + $0x8] sm:$0xff] %vm19_vm0, %v81_v11 }
  0xe2   :  { %v88_v14 = vld [vmem:[#allocation2] sm:$0xff] }
  0xe3   :  { %v97_v15 = vadd.f32 %v161_v13, %v88_v14 }
  0xe4   :  { %v89_v16 = vld [vmem:[#allocation2 + $0x8] sm:$0xff] }
  0xe5   :  { %v101_v17 = vmul.f32 0.70710677, %v97_v15  ;;  %v98_v18 = vadd.f32 %v161_v13, %v89_v16  ;;  %v99_v60 = vmul.f32 0.5, %v97_v15 }
  0xe7   :  { %v103_v19 = vand.u32 2147483647, %v101_v17  ;;  %v102_v20 = vmul.f32 0.70710677, %v98_v18  ;;  %vm143_vm3 = vcmp.ge.f32.partialorder %v101_v17, 0.0  ;;  %v100_v1 = vmul.f32 0.5, %v98_v18 }
  0xe9   :  { %v105_v21 = vmul.f32 0.3275911, %v103_v19  ;;  %v104_v22 = vand.u32 2147483647, %v102_v20  ;;  %v131_v26 = vsub.f32 0.0, %v103_v19  ;;  %vm144_vm4 = vcmp.ge.f32.partialorder %v102_v20, 0.0 }
  0xeb   :  { %v107_v23 = vadd.f32 1.0, %v105_v21  ;;  %v106_v24 = vmul.f32 0.3275911, %v104_v22  ;;  %v132_v27 = vsub.f32 0.0, %v104_v22  ;;  %v133_v29 = vmul.f32 %v131_v26, %v103_v19 }
  0xed   :  { %173 = vrcp.f32 %v107_v23  ;;  %v108_v25 = vadd.f32 1.0, %v106_v24  ;;  %v134_v33 = vmul.f32 %v132_v27, %v104_v22  ;;  %v135_v34 = vmul.f32 1.442695, %v133_v29 }
  0xef   :  { %175 = vrcp.f32 %v108_v25  ;;  %v137_v39 = vmul.f32 1.442695, %v134_v33 }
  0xf0   :  { %177 = vpow2.f32 %v135_v34 }
  0xf1   :  { %179 = vpow2.f32 %v137_v39 }
  0xf7   :  { %v174_v28 = vpop.eup %173 }
  0xf8   :  { %v113_v30 = vmul.f32 1.0614054, %v174_v28 }
  0xf9   :  { %v176_v31 = vpop.eup %175 }
  0xfa   :  { %v115_v32 = vadd.f32 -1.4531521, %v113_v30  ;;  %v114_v35 = vmul.f32 1.0614054, %v176_v31  ;;  %v178_v50 = vpop.eup %177 }
  0xfb   :  { %v180_v54 = vpop.eup %179 }
  0xfc   :  { %v117_v36 = vmul.f32 %v174_v28, %v115_v32  ;;  %v116_v37 = vadd.f32 -1.4531521, %v114_v35 }
  0xfe   :  { %v119_v38 = vadd.f32 1.4214138, %v117_v36  ;;  %v118_v40 = vmul.f32 %v176_v31, %v116_v37 }
 0x100   :  { %v121_v41 = vmul.f32 %v174_v28, %v119_v38  ;;  %v120_v42 = vadd.f32 1.4214138, %v118_v40 }
 0x102   :  { %v123_v43 = vadd.f32 -0.28449672, %v121_v41  ;;  %v122_v44 = vmul.f32 %v176_v31, %v120_v42 }
 0x104   :  { %v125_v45 = vmul.f32 %v174_v28, %v123_v43  ;;  %v124_v46 = vadd.f32 -0.28449672, %v122_v44 }
 0x106   :  { %v127_v47 = vadd.f32 0.2548296, %v125_v45  ;;  %v126_v48 = vmul.f32 %v176_v31, %v124_v46 }
 0x108   :  { %v129_v49 = vmul.f32 %v174_v28, %v127_v47  ;;  %v128_v51 = vadd.f32 0.2548296, %v126_v48 }
 0x10a   :  { %v139_v52 = vmul.f32 %v178_v50, %v129_v49  ;;  %v130_v53 = vmul.f32 %v176_v31, %v128_v51 }
 0x10c   :  { %v141_v55 = vsub.f32 1.0, %v139_v52  ;;  %v140_v56 = vmul.f32 %v180_v54, %v130_v53 }
 0x10e   :  { %v145_v57 = vsub.f32 0.0, %v141_v55  ;;  %v142_v58 = vsub.f32 1.0, %v140_v56 }
 0x110   :  { %v147_v59 = vsel %vm143_vm3, %v141_v55, %v145_v57  ;;  %v146_v62 = vsub.f32 0.0, %v142_v58 }
 0x111   :  { %v149_v61 = vadd.f32 1.0, %v147_v59 }
 0x112   :  { %v148_v0 = vsel %vm144_vm4, %v142_v58, %v146_v62 }
 0x113   :  { %v151_v63 = vmul.f32 %v149_v61, %v99_v60  ;;  %v150_v2 = vadd.f32 1.0, %v148_v0 }
 0x115   :  { %153 = vst.msk [vmem:[%s230_s3] sm:$0xff] %vm19_vm0, %v151_v63  ;;  %v152_v3 = vmul.f32 %v150_v2, %v100_v1 }
 0x117   :  { %154 = vst.msk [vmem:[%s230_s3 + $0x8] sm:$0xff] %vm19_vm0, %v152_v3 }

// kernel: transformer_encoder.17
= control target key start
LH: loop header
LB: loop body
LE: loop exit
PB: predicated region body
PF: predicated region fallthrough
CT: control target
= control target key end

     0   :  { %v179_v1 = vmov 0.0   ;;  %vm180_vm0 = vmmov 0   ;;  %vm23_vm1 = vcmask 130048   ;;  %s248_s0 = inlined_call_operand.vmem [shape: f32[16,32], index: 0, kind: input, shape index: {}]   ;;  %s249_s1 = inlined_call_operand.vmem [shape: bf16[32,16], index: 1, kind: input, shape index: {}]   ;;  %s250_s2 = inlined_call_operand.vmem [shape: f32[1,16], index: 2, kind: input, shape index: {}]   ;;  %s251_s3 = inlined_call_operand.vmem [shape: f32[16,16], index: 3, kind: input, shape index: {}]   ;;  %s252_s4 = inlined_call_operand.hbm [shape: f32[16,16], index: 4, kind: output, shape index: {}]  }
   0x1   :  { %v153_v0 = vld [vmem:[%s249_s1] sm:$0xff]   ;;  %140 = vmatprep.subr.bf16.mxu0 %v179_v1  ;;  %v154_v2 = vld [vmem:[%s249_s1 + $0x8] sm:$0xff]   ;;  %144 = vmatprep.mubr.msk.bf16.mxu0 %vm180_vm0, %v179_v1 }
   0x2   :  { %141 = vmatpush3.bf16.msra.mxu0 %v153_v0  ;;  %v28_v3 = vld [vmem:[%s248_s0] sm:$0xff]  ;;  %v29_v4 = vld [vmem:[%s248_s0 + $0x8] sm:$0xff] }
   0x3   :  { %9 = vsyncpa [#allocation4], 0  ;;  %142 = vmatprep.subr.bf16.mxu0 %v179_v1  ;;  %24 = vst.msk [vmem:[#allocation2] sm:$0xff] %vm23_vm1, %v179_v1  ;;  %v30_v5 = vpack.c.bf16 %v29_v4, %v28_v3  ;;  %vm47_vm2 = vcmask 261120   ;;  %v136_v14 = vld [vmem:[%s250_s2] ss:$0 sm:$0xff] }
   0x4   :  { %25 = vst.msk [vmem:[#allocation2 + $0x8] sm:$0xff] %vm23_vm1, %v179_v1  ;;  %v111_v16 = vld [vmem:[%s251_s3] sm:$0xff]  ;;  %s181_s25 = smov [#allocation3]   ;;  %v112_v19 = vld [vmem:[%s251_s3 + $0x8] sm:$0xff] }
   0x5   :  { %s122_s26 = sshll.u32 %s181_s25, 4  ;;  %s123_s26 = int_to_ptr.vmem [resolvable:$true] %s122_s26 }
   0x6   :  { %143 = vmatpush3.bf16.msra.mxu0 %v154_v2  ;;  %s155_s2 = scalar_lea.vmem %s123_s26, 256  ;;  %p160_p1 = scmp.lt.s32.totalorder %s123_s26, %s123_s26 }
   0x7   :  { %p156_p0 = scmp.ne.s32.totalorder %s123_s26, %s155_s2  ;;  %p161_p2 = scmp.lt.s32.totalorder %s155_s2, %s155_s2 }
   0x9   :  { %145 = vmatmul.mubr.msk.bf16.vlgmr.msra.gmra.mrb[0].mxu0 %vm47_vm2, %v30_v5  ;;  %p162_p3 = por %p161_p2, %p160_p1 }
   0xa   :  { %v26_v6 = vld [vmem:[#allocation2] sm:$0xff] }
   0xb   :  { %v27_v8 = vld [vmem:[#allocation2 + $0x8] sm:$0xff]  ;;  %p163_p4 = pnand %p162_p3, %p156_p0 }
  0xdc   :  { %v85_v7 = vpop.f32.mrb[0].mxu0 }
  0xdd   :  { %v92_v9 = vadd.f32 %v85_v7, %v26_v6  ;;  %v146_v10 = vpop.f32.mrb[1].mxu0 }
  0xde   :  { %v88_v11 = vpop.f32.mrb[2].mxu0 }
  0xdf   :  { %95 = vst.msk [vmem:[#allocation2] sm:$0xff] %vm23_vm1, %v92_v9  ;;  %v93_v12 = vadd.f32 %v88_v11, %v27_v8  ;;  %v147_v13 = vpop.f32.mrb[3].mxu0 }
  0xe1   :  { %96 = vst.msk [vmem:[#allocation2 + $0x8] sm:$0xff] %vm23_vm1, %v93_v12 }
  0xe6   :  { %v100_v15 = vld [vmem:[#allocation2] sm:$0xff] }
  0xe7   :  { %v109_v17 = vadd.f32 %v136_v14, %v100_v15 }
  0xe8   :  { %v101_v18 = vld [vmem:[#allocation2 + $0x8] sm:$0xff] }
  0xe9   :  { %v110_v20 = vadd.f32 %v136_v14, %v101_v18  ;;  %v113_v21 = vadd.f32 %v111_v16, %v109_v17 }
  0xeb   :  { %v114_v22 = vadd.f32 %v112_v19, %v110_v20  ;;  %115 = vst.msk [vmem:[#allocation3] sm:$0xff] %vm23_vm1, %v113_v21 }
  0xed   :  { %116 = vst.msk [vmem:[#allocation3 + $0x8] sm:$0xff] %vm23_vm1, %v114_v22 }
  0xee   :  { %166 = shalt.err (!%p163_p4)
}
  0xef   :  { %s167_s5 = scalar_lea.hbm %s252_s4, 256 }
  0xf0   :  { %p168_p5 = scmp.ne.s32.totalorder %s252_s4, %s167_s5  ;;  %p171_p6 = scmp.lt.u32.totalorder %s167_s5, %s252_s4 }
  0xf2   :  { %p173_p7 = pnand %p171_p6, %p168_p5 }
  0xf4   :  { %176 = shalt.err (!%p173_p7)
}
  0xf5   :  { %s182_s9 = smov 128   ;;  %s183_s10 = smov 8  }
  0xf6   :  { %128 = dma.vmem_to_hbm [thread:$0]  %s123_s26, 256, %s252_s4, [#allocation4], %s182_s9, %s182_s9, %s183_s10  }
  0xf7   :  { %177 = dma.done.wait [#allocation4], 256  }
  0xf8   :  { %178 = vsyncadd [#allocation4], 4294967040 }
  0xf9   :  { %132 = vsyncpa [#allocation4], 1 }

// kernel: transformer_encoder.13
= control target key start
LH: loop header
LB: loop body
LE: loop exit
PB: predicated region body
PF: predicated region fallthrough
CT: control target
= control target key end

     0   :  { %s1129_s9 = smov 0   ;;  %s1261_s0 = inlined_call_operand.vmem [shape: f32[2,8,48], index: 0, kind: input, shape index: {}]   ;;  %s1262_s1 = inlined_call_operand.vmem [shape: f32[2,8,16], index: 1, kind: input, shape index: {}]   ;;  %s1263_s2 = inlined_call_operand.vmem [shape: f32[2,8,16], index: 2, kind: output, shape index: {}]  }
   0x1 LB: > { %s916_s10 = sadd.s32 4294967295, %s1096_s9   ;;  %p920_p0 = scmp.ge.s32.totalorder %s1096_s9, 1  ;;  %s1096_s9 = sphi %s1129_s9, %s12_s9  }
   0x2   : > { %p120_p1 = scmp.lt.s32.totalorder %s1096_s9, 3 }
   0x4   : > { %p121_p2 = pnand %p920_p0, %p120_p1 }
   0x5   : > { %p144_p3 = scmp.lt.s32.totalorder (!%p121_p2), %s916_s10, 1  ;;  %v1098_v0 = vmov (!%p121_p2), 0.0   ;;  %vm1099_vm0 = vmmov (!%p121_p2), 0   ;;  %vm163_vm1 = vcmask (!%p121_p2), 31744   ;;  %s1100_s18 = smov (!%p121_p2), 112   ;;  %vm256_vm2 = vcmask (!%p121_p2), 64512  }
   0x6   : > { %124 = sbr.rel (%p121_p2) target bundleno = 2615 (0xa37), region = 28  ;;  %962 = vmatprep.subr.bf16.mxu0 (!%p121_p2), %v1098_v0  ;;  %964 = vmatprep.mubr.msk.bf16.mxu0 (!%p121_p2), %vm1099_vm0, %v1098_v0  ;;  %s1101_s19 = smov (!%p121_p2), 124   ;;  %vm286_vm3 = vcmask (!%p121_p2), 1043456   ;;  %vm847_vm4 = vcmask (!%p121_p2), 97280   ;;  %vm849_vm5 = vcmask (!%p121_p2), 130048  }
   0x7   : > { %968 = vmatprep.subr.bf16.mxu1 (!%p121_p2), %v1098_v0  ;;  %970 = vmatprep.mubr.msk.bf16.mxu1 (!%p121_p2), %vm1099_vm0, %v1098_v0  ;;  %s1102_s20 = smov (!%p121_p2), 96   ;;  %s1103_s21 = smov (!%p121_p2), 108  }
   0x8   : > { %s1104_s22 = smov (!%p121_p2), 92   ;;  %s1105_s23 = smov (!%p121_p2), 120  }
   0x9   : > { %s1106_s24 = smov (!%p121_p2), 104   ;;  %s1107_s25 = smov (!%p121_p2), 116  }
   0xa   : > { %s1108_s26 = smov (!%p121_p2), 88   ;;  %s1109_s27 = smov (!%p121_p2), 100  }
   0xb   : > { %s1110_s28 = smov (!%p121_p2), 84   ;;  %s1111_s29 = smov (!%p121_p2), 4  }
   0xc   : > { %s1112_s30 = smov (!%p121_p2), 8   ;;  %s1113_s3 = smov (!%p121_p2), 12  }
   0xd   : > { %s1265_s10 = smov (!%p144_p3, %s916_s10), 1 }
   0xe   : > { %s1143_s11 = sshll.u32 %s1265_s10, 3 }
   0xf   : > { %s147_s14 = scalar_lea.vmem %s1261_s0, %s1143_s11  ;;  %s151_s17 = scalar_lea.vmem %s1262_s1, %s1143_s11 }
  0x10   : > { %v157_v1 = vld [vmem:[%s147_s14] sm:$0xff]  ;;  %s155_s6 = scalar_lea.vmem %s1263_s2, %s1143_s11 }
  0x11   : > { %v161_v2 = vld [vmem:[%s151_s17] sm:$0xff]  ;;  %v1153_v3 = vpack.c.bf16 %v157_v1, %v157_v1  ;;  %v158_v6 = vmul.f32 0.5, %v157_v1 }
  0x12   : > { %v1155_v4 = vpack.c.bf16 %v161_v2, %v161_v2 }
  0x13   : > { %211 = vrot.lane.b32.xlu0 %v1153_v3, %s1100_s18  ;;  %v1161_v7 = vpack.c.bf16 %v158_v6, %v158_v6 }
  0x14   : > { %v168_v5 = vsel %vm163_vm1, %v1155_v4, 0 }
  0x15   : > { %963 = vmatpush3.bf16.xpose.msra.mxu0 %v168_v5 }
  0x16   : > { %974 = vmatprep.subr.bf16.mxu0 %v1098_v0 }
  0x1c   : > { %965 = vmatmul.mubr.msk.bf16.vlgmr.msra.gmra.mrb[0].mxu0 %vm163_vm1, %v1161_v7 }
  0x1d   : > { %976 = vmatprep.mubr.msk.bf16.mxu0 %vm1099_vm0, %v1098_v0 }
  0x85   : > { %v212_v8 = vpop.permute.xlu0 %211 }
  0x86   : > { %v214_v9 = vsel %vm163_vm1, %v212_v8, 0 }
  0x87   : > { %969 = vmatpush3.bf16.xpose.msra.mxu1 %v214_v9 }
  0x88   : > { %980 = vmatprep.subr.bf16.mxu1 %v1098_v0 }
  0x8e   : > { %971 = vmatmul.mubr.msk.bf16.vlgmr.msra.gmra.mrb[0].mxu1 %vm163_vm1, %v1161_v7 }
  0x8f   : > { %982 = vmatprep.mubr.msk.bf16.mxu1 %vm1099_vm0, %v1098_v0 }
  0xef   : > { %v204_v10 = vpop.f32.mrb[0].mxu0 }
  0xf0   : > { %v257_v11 = vsel %vm256_vm2, %v204_v10, -inf  ;;  %v966_v12 = vpop.f32.mrb[1].mxu0 }
  0xf1   : > { %258 = vmax.xlane.f32.xlu0 %v257_v11  ;;  %v207_v13 = vpop.f32.mrb[2].mxu0 }
  0xf2   : > { %v967_v14 = vpop.f32.mrb[3].mxu0 }
 0x107   : > { %331 = vrot.lane.b32.xlu0 %v1161_v7, %s1101_s19 }
 0x161   : > { %v250_v15 = vpop.f32.mrb[0].mxu1 }
 0x162   : > { %v972_v16 = vpop.f32.mrb[1].mxu1  ;;  %v268_v17 = vsel %vm256_vm2, %v250_v15, -inf }
 0x163   : > { %269 = vmax.xlane.f32.xlu1 %v268_v17  ;;  %v253_v18 = vpop.f32.mrb[2].mxu1 }
 0x164   : > { %v973_v19 = vpop.f32.mrb[3].mxu1 }
 0x174   : > { %281 = vrot.lane.b32.xlu1 %v1153_v3, %s1102_s20 }
 0x178   : > { %334 = vrot.lane.b32.xlu1 %v1155_v4, %s1101_s19 }
 0x17e   : > { %v259_v20 = vpop.xlane.xlu0 %258 }
 0x17f   : > { %v260_v21 = vsub.f32 %v204_v10, %v259_v20 }
 0x181   : > { %v261_v22 = vmul.f32 1.442695, %v260_v21 }
 0x182   : > { %v332_v32 = vpop.permute.xlu0 %331 }
 0x183   : > { %1058 = vpow2.f32 %v261_v22 }
 0x18d   : > { %v1059_v23 = vpop.eup %1058 }
 0x18e   : > { %v263_v24 = vsel %vm256_vm2, %v1059_v23, 0.0 }
 0x19c   : > { %264 = vadd.xlane.f32.xlu1 %v263_v24 }
 0x1f0   : > { %v270_v25 = vpop.xlane.xlu1 %269 }
 0x1f1   : > { %v271_v26 = vsub.f32 %v250_v15, %v270_v25 }
 0x1f3   : > { %v272_v27 = vmul.f32 1.442695, %v271_v26 }
 0x1f4   : > { %v282_v28 = vpop.permute.xlu1 %281 }
 0x1f5   : > { %1060 = vpow2.f32 %v272_v27  ;;  %v288_v29 = vsel %vm286_vm3, %v282_v28, 0 }
 0x1f6   : > { %975 = vmatpush3.bf16.msra.mxu0 %v288_v29 }
 0x1f7   : > { %986 = vmatprep.subr.bf16.mxu0 %v1098_v0 }
 0x1f8   : > { %v335_v30 = vpop.permute.xlu1 %334 }
 0x1f9   : > { %v340_v31 = vsel %vm163_vm1, %v335_v30, 0 }
 0x1fa   : > { %981 = vmatpush3.bf16.xpose.msra.mxu1 %v340_v31 }
 0x1fb   : > { %992 = vmatprep.subr.bf16.mxu1 %v1098_v0 }
 0x1ff   : > { %v1061_v33 = vpop.eup %1060 }
 0x200   : > { %v274_v34 = vsel %vm256_vm2, %v1061_v33, 0.0 }
 0x201   : > { %275 = vadd.xlane.f32.xlu1 %v274_v34  ;;  %983 = vmatmul.mubr.msk.bf16.vlgmr.msra.gmra.mrb[4].mxu1 %vm163_vm1, %v332_v32 }
 0x202   : > { %994 = vmatprep.mubr.msk.bf16.mxu1 %vm1099_vm0, %v1098_v0 }
 0x212   : > { %382 = vrot.lane.b32.xlu1 %v1153_v3, %s1103_s21 }
 0x229   : > { %v265_v35 = vpop.xlane.xlu1 %264 }
 0x22a   : > { %1062 = vrcp.f32 %v265_v35 }
 0x234   : > { %v1063_v37 = vpop.eup %1062 }
 0x235   : > { %v267_v39 = vmul.f32 %v1063_v37, %v1059_v23 }
 0x28e   : > { %v276_v36 = vpop.xlane.xlu1 %275 }
 0x28f   : > { %1064 = vrcp.f32 %v276_v36 }
 0x292   : > { %v383_v41 = vpop.permute.xlu1 %382 }
 0x293   : > { %v385_v43 = vsel %vm163_vm1, %v383_v41, 0 }
 0x299   : > { %v1065_v38 = vpop.eup %1064 }
 0x29a   : > { %v278_v40 = vmul.f32 %v1065_v38, %v1061_v33 }
 0x29c   : > { %v279_v42 = vadd.f32 %v278_v40, %v267_v39 }
 0x29e   : > { %v280_v44 = vpack.c.bf16 %v279_v42, %v279_v42 }
 0x2a0   : > { %977 = vmatmul.mubr.msk.bf16.vlgmr.msra.gmra.mrb[4].mxu0 %vm256_vm2, %v280_v44 }
 0x2a1   : > { %987 = vmatpush3.bf16.xpose.msra.mxu0 %v385_v43  ;;  %988 = vmatprep.mubr.msk.bf16.mxu0 %vm1099_vm0, %v1098_v0 }
 0x2a2   : > { %998 = vmatprep.subr.bf16.mxu0 %v1098_v0 }
 0x2a8   : > { %989 = vmatmul.mubr.msk.bf16.vlgmr.msra.gmra.mrb[8].mxu0 %vm163_vm1, %v332_v32 }
 0x2a9   : > { %1000 = vmatprep.mubr.msk.bf16.mxu0 %vm1099_vm0, %v1098_v0 }
 0x2d4   : > { %v376_v45 = vpop.f32.mrb[4].mxu1 }
 0x2d5   : > { %v427_v46 = vsel %vm256_vm2, %v376_v45, -inf  ;;  %v984_v47 = vpop.f32.mrb[5].mxu1 }
 0x2d6   : > { %428 = vmax.xlane.f32.xlu1 %v427_v46  ;;  %v379_v48 = vpop.f32.mrb[6].mxu1 }
 0x2d7   : > { %v985_v49 = vpop.f32.mrb[7].mxu1 }
 0x363   : > { %v429_v50 = vpop.xlane.xlu1 %428 }
 0x364   : > { %v430_v51 = vsub.f32 %v376_v45, %v429_v50 }
 0x366   : > { %v431_v52 = vmul.f32 1.442695, %v430_v51 }
 0x368   : > { %1066 = vpow2.f32 %v431_v52 }
 0x372   : > { %v1067_v53 = vpop.eup %1066 }
 0x373   : > { %v1197_v54 = vpop.f32.mrb[4].mxu0  ;;  %v433_v55 = vsel %vm256_vm2, %v1067_v53, 0.0 }
 0x374   : > { %434 = vadd.xlane.f32.xlu1 %v433_v55  ;;  %v978_v56 = vpop.f32.mrb[5].mxu0 }
 0x375   : > { %v327_v57 = vpop.f32.mrb[6].mxu0 }
 0x376   : > { %v979_v58 = vpop.f32.mrb[7].mxu0 }
 0x37b   : > { %v421_v59 = vpop.f32.mrb[8].mxu0 }
 0x37c   : > { %v990_v60 = vpop.f32.mrb[9].mxu0  ;;  %v438_v61 = vsel %vm256_vm2, %v421_v59, -inf }
 0x37d   : > { %439 = vmax.xlane.f32.xlu0 %v438_v61  ;;  %v424_v62 = vpop.f32.mrb[10].mxu0 }
 0x37e   : > { %v991_v63 = vpop.f32.mrb[11].mxu0 }
 0x385   : > { %451 = vrot.lane.b32.xlu1 %v1153_v3, %s1104_s22 }
 0x393   : > { %501 = vrot.lane.b32.xlu0 %v1155_v4, %s1105_s23 }
 0x401   : > { %v435_v1 = vpop.xlane.xlu1 %434 }
 0x405   : > { %v452_v2 = vpop.permute.xlu1 %451 }
 0x406   : > { %v457_v5 = vsel %vm286_vm3, %v452_v2, 0 }
 0x407   : > { %993 = vmatpush3.bf16.msra.mxu1 %v457_v5 }
 0x408   : > { %1004 = vmatprep.subr.bf16.mxu1 %v1098_v0 }
 0x40a   : > { %v440_v6 = vpop.xlane.xlu0 %439 }
 0x40b   : > { %v441_v8 = vsub.f32 %v421_v59, %v440_v6 }
 0x40d   : > { %v442_v9 = vmul.f32 1.442695, %v441_v8 }
 0x40e   : > { %v502_v12 = vpop.permute.xlu0 %501 }
 0x40f   : > { %1068 = vpow2.f32 %v442_v9  ;;  %v507_v13 = vsel %vm163_vm1, %v502_v12, 0 }
 0x410   : > { %999 = vmatpush3.bf16.xpose.msra.mxu0 %v507_v13  ;;  %1070 = vrcp.f32 %v435_v1 }
 0x411   : > { %1010 = vmatprep.subr.bf16.mxu0 %v1098_v0 }
 0x419   : > { %v1069_v10 = vpop.eup %1068 }
 0x41a   : > { %v444_v11 = vsel %vm256_vm2, %v1069_v10, 0.0  ;;  %v1071_v17 = vpop.eup %1070 }
 0x41b   : > { %445 = vadd.xlane.f32.xlu1 %v444_v11  ;;  %v437_v19 = vmul.f32 %v1071_v17, %v1067_v53 }
 0x42c   : > { %549 = vrot.lane.b32.xlu1 %v1153_v3, %s1106_s24 }
 0x430   : > { %499 = vrot.lane.b32.xlu1 %v1161_v7, %s1105_s23 }
 0x4a8   : > { %v446_v14 = vpop.xlane.xlu1 %445 }
 0x4a9   : > { %1072 = vrcp.f32 %v446_v14 }
 0x4ac   : > { %v550_v15 = vpop.permute.xlu1 %549 }
 0x4ad   : > { %v552_v22 = vsel %vm163_vm1, %v550_v15, 0 }
 0x4b0   : > { %v500_v16 = vpop.permute.xlu1 %499 }
 0x4b1   : > { %1001 = vmatmul.mubr.msk.bf16.vlgmr.msra.gmra.mrb[12].mxu0 %vm163_vm1, %v500_v16 }
 0x4b2   : > { %1012 = vmatprep.mubr.msk.bf16.mxu0 %vm1099_vm0, %v1098_v0 }
 0x4b3   : > { %v1073_v18 = vpop.eup %1072 }
 0x4b4   : > { %v448_v20 = vmul.f32 %v1073_v18, %v1069_v10 }
 0x4b6   : > { %v449_v21 = vadd.f32 %v448_v20, %v437_v19 }
 0x4b8   : > { %v450_v23 = vpack.c.bf16 %v449_v21, %v449_v21 }
 0x4ba   : > { %995 = vmatmul.mubr.msk.bf16.vlgmr.msra.gmra.mrb[8].mxu1 %vm256_vm2, %v450_v23 }
 0x4bb   : > { %1005 = vmatpush3.bf16.xpose.msra.mxu1 %v552_v22  ;;  %1006 = vmatprep.mubr.msk.bf16.mxu1 %vm1099_vm0, %v1098_v0 }
 0x4bc   : > { %1016 = vmatprep.subr.bf16.mxu1 %v1098_v0 }
 0x4c2   : > { %1007 = vmatmul.mubr.msk.bf16.vlgmr.msra.gmra.mrb[12].mxu1 %vm163_vm1, %v500_v16 }
 0x4c3   : > { %1018 = vmatprep.mubr.msk.bf16.mxu1 %vm1099_vm0, %v1098_v0 }
 0x584   : > { %v543_v24 = vpop.f32.mrb[12].mxu0 }
 0x585   : > { %v594_v25 = vsel %vm256_vm2, %v543_v24, -inf  ;;  %v1002_v26 = vpop.f32.mrb[13].mxu0 }
 0x586   : > { %595 = vmax.xlane.f32.xlu1 %v594_v25  ;;  %v546_v27 = vpop.f32.mrb[14].mxu0 }
 0x587   : > { %v1003_v28 = vpop.f32.mrb[15].mxu0 }
 0x58d   : > { %v1222_v29 = vpop.f32.mrb[8].mxu1 }
 0x58e   : > { %v996_v30 = vpop.f32.mrb[9].mxu1 }
 0x58f   : > { %v496_v31 = vpop.f32.mrb[10].mxu1 }
 0x590   : > { %v997_v32 = vpop.f32.mrb[11].mxu1 }
 0x595   : > { %v588_v33 = vpop.f32.mrb[12].mxu1 }
 0x596   : > { %v1008_v34 = vpop.f32.mrb[13].mxu1  ;;  %v605_v35 = vsel %vm256_vm2, %v588_v33, -inf }
 0x597   : > { %606 = vmax.xlane.f32.xlu0 %v605_v35  ;;  %v591_v36 = vpop.f32.mrb[14].mxu1  ;;  %668 = vrot.lane.b32.xlu1 %v1155_v4, %s1107_s25 }
 0x598   : > { %v1009_v37 = vpop.f32.mrb[15].mxu1 }
 0x613   : > { %v596_v38 = vpop.xlane.xlu1 %595 }
 0x614   : > { %v597_v39 = vsub.f32 %v543_v24, %v596_v38 }
 0x616   : > { %v598_v40 = vmul.f32 1.442695, %v597_v39 }
 0x617   : > { %v669_v41 = vpop.permute.xlu1 %668 }
 0x618   : > { %1074 = vpow2.f32 %v598_v40  ;;  %v674_v42 = vsel %vm163_vm1, %v669_v41, 0 }
 0x619   : > { %1017 = vmatpush3.bf16.xpose.msra.mxu1 %v674_v42 }
 0x61a   : > { %1028 = vmatprep.subr.bf16.mxu1 %v1098_v0 }
 0x622   : > { %v1075_v43 = vpop.eup %1074 }
 0x623   : > { %v600_v44 = vsel %vm256_vm2, %v1075_v43, 0.0 }
 0x624   : > { %v607_v45 = vpop.xlane.xlu0 %606  ;;  %601 = vadd.xlane.f32.xlu0 %v600_v44 }
 0x625   : > { %v608_v46 = vsub.f32 %v588_v33, %v607_v45 }
 0x627   : > { %v609_v47 = vmul.f32 1.442695, %v608_v46 }
 0x629   : > { %1076 = vpow2.f32 %v609_v47 }
 0x633   : > { %v1077_v4 = vpop.eup %1076 }
 0x634   : > { %v611_v48 = vsel %vm256_vm2, %v1077_v4, 0.0 }
 0x635   : > { %612 = vadd.xlane.f32.xlu1 %v611_v48 }
 0x63a   : > { %618 = vrot.lane.b32.xlu0 %v1153_v3, %s1108_s26 }
 0x63e   : > { %666 = vrot.lane.b32.xlu0 %v1161_v7, %s1107_s25 }
 0x646   : > { %716 = vrot.lane.b32.xlu1 %v1153_v3, %s1109_s27 }
 0x6b1   : > { %v602_v49 = vpop.xlane.xlu0 %601 }
 0x6b2   : > { %1078 = vrcp.f32 %v602_v49 }
 0x6b5   : > { %v619_v50 = vpop.permute.xlu0 %618 }
 0x6b6   : > { %v624_v51 = vsel %vm286_vm3, %v619_v50, 0 }
 0x6b7   : > { %1011 = vmatpush3.bf16.msra.mxu0 %v624_v51 }
 0x6b8   : > { %1022 = vmatprep.subr.bf16.mxu0 %v1098_v0 }
 0x6b9   : > { %v667_v52 = vpop.permute.xlu0 %666 }
 0x6ba   : > { %1019 = vmatmul.mubr.msk.bf16.vlgmr.msra.gmra.mrb[16].mxu1 %vm163_vm1, %v667_v52 }
 0x6bb   : > { %1030 = vmatprep.mubr.msk.bf16.mxu1 %vm1099_vm0, %v1098_v0 }
 0x6bc   : > { %v1079_v7 = vpop.eup %1078 }
 0x6bd   : > { %v604_v56 = vmul.f32 %v1079_v7, %v1075_v43 }
 0x6c2   : > { %v613_v53 = vpop.xlane.xlu1 %612 }
 0x6c3   : > { %1080 = vrcp.f32 %v613_v53 }
 0x6c6   : > { %v717_v58 = vpop.permute.xlu1 %716 }
 0x6c7   : > { %v719_v60 = vsel %vm163_vm1, %v717_v58, 0 }
 0x6cd   : > { %v1081_v55 = vpop.eup %1080 }
 0x6ce   : > { %v615_v57 = vmul.f32 %v1081_v55, %v1077_v4 }
 0x6d0   : > { %v616_v59 = vadd.f32 %v615_v57, %v604_v56 }
 0x6d2   : > { %v617_v61 = vpack.c.bf16 %v616_v59, %v616_v59 }
 0x6d4   : > { %1013 = vmatmul.mubr.msk.bf16.vlgmr.msra.gmra.mrb[16].mxu0 %vm256_vm2, %v617_v61 }
 0x6d5   : > { %1023 = vmatpush3.bf16.xpose.msra.mxu0 %v719_v60  ;;  %1024 = vmatprep.mubr.msk.bf16.mxu0 %vm1099_vm0, %v1098_v0 }
 0x6dc   : > { %1025 = vmatmul.mubr.msk.bf16.vlgmr.msra.gmra.mrb[20].mxu0 %vm163_vm1, %v667_v52 }
 0x78d   : > { %v710_v62 = vpop.f32.mrb[16].mxu1 }
 0x78e   : > { %v761_v63 = vsel %vm256_vm2, %v710_v62, -inf  ;;  %v1020_v1 = vpop.f32.mrb[17].mxu1 }
 0x78f   : > { %762 = vmax.xlane.f32.xlu1 %v761_v63  ;;  %v713_v2 = vpop.f32.mrb[18].mxu1 }
 0x790   : > { %v1021_v5 = vpop.f32.mrb[19].mxu1 }
 0x7a7   : > { %v660_v6 = vpop.f32.mrb[16].mxu0 }
 0x7a8   : > { %v1014_v8 = vpop.f32.mrb[17].mxu0 }
 0x7a9   : > { %v663_v9 = vpop.f32.mrb[18].mxu0 }
 0x7aa   : > { %v1015_v10 = vpop.f32.mrb[19].mxu0 }
 0x7af   : > { %v755_v11 = vpop.f32.mrb[20].mxu0 }
 0x7b0   : > { %v1026_v12 = vpop.f32.mrb[21].mxu0  ;;  %v772_v13 = vsel %vm256_vm2, %v755_v11, -inf }
 0x7b1   : > { %773 = vmax.xlane.f32.xlu0 %v772_v13  ;;  %v758_v14 = vpop.f32.mrb[22].mxu0 }
 0x7b2   : > { %v1027_v0 = vpop.f32.mrb[23].mxu0 }
 0x81c   : > { %v763_v15 = vpop.xlane.xlu1 %762 }
 0x81d   : > { %v764_v16 = vsub.f32 %v710_v62, %v763_v15 }
 0x81f   : > { %v765_v17 = vmul.f32 1.442695, %v764_v16 }
 0x821   : > { %1082 = vpow2.f32 %v765_v17 }
 0x82b   : > { %v1083_v18 = vpop.eup %1082 }
 0x82c   : > { %v767_v19 = vsel %vm256_vm2, %v1083_v18, 0.0 }
 0x82d   : > { %768 = vadd.xlane.f32.xlu0 %v767_v19 }
 0x83e   : > { %v774_v20 = vpop.xlane.xlu0 %773 }
 0x83f   : > { %v775_v21 = vsub.f32 %v755_v11, %v774_v20 }
 0x841   : > { %v776_v22 = vmul.f32 1.442695, %v775_v21 }
 0x843   : > { %1084 = vpow2.f32 %v776_v22  ;;  %785 = vrot.lane.b32.xlu0 %v1153_v3, %s1110_s28 }
 0x84d   : > { %v1085_v23 = vpop.eup %1084 }
 0x84e   : > { %v778_v24 = vsel %vm256_vm2, %v1085_v23, 0.0 }
 0x84f   : > { %779 = vadd.xlane.f32.xlu1 %v778_v24 }
 0x860   : > { %834 = vrot.lane.b32.xlu1 %v1222_v29, %s1111_s29 }
 0x864   : > { %838 = vrot.lane.b32.xlu1 %v660_v6, %s1112_s30 }
 0x8ba   : > { %v769_v25 = vpop.xlane.xlu0 %768 }
 0x8bb   : > { %1086 = vrcp.f32 %v769_v25 }
 0x8be   : > { %v786_v26 = vpop.permute.xlu0 %785 }
 0x8bf   : > { %v791_v27 = vsel %vm286_vm3, %v786_v26, 0 }
 0x8c0   : > { %1029 = vmatpush3.bf16.msra.mxu1 %v791_v27 }
 0x8c5   : > { %v1087_v30 = vpop.eup %1086 }
 0x8c6   : > { %v771_v3 = vmul.f32 %v1087_v30, %v1083_v18 }
 0x8dc   : > { %v780_v28 = vpop.xlane.xlu1 %779 }
 0x8dd   : > { %1088 = vrcp.f32 %v780_v28 }
 0x8e0   : > { %v835_v38 = vpop.permute.xlu1 %834 }
 0x8e1   : > { %v845_v40 = vsel %vm163_vm1, %v1197_v54, %v835_v38 }
 0x8e4   : > { %v839_v39 = vpop.permute.xlu1 %838 }
 0x8e5   : > { %v846_v41 = vsel %vm256_vm2, %v845_v40, %v839_v39 }
 0x8e7   : > { %v1089_v31 = vpop.eup %1088 }
 0x8e8   : > { %v782_v32 = vmul.f32 %v1089_v31, %v1085_v23 }
 0x8ea   : > { %v783_v33 = vadd.f32 %v782_v32, %v771_v3 }
 0x8ec   : > { %v784_v34 = vpack.c.bf16 %v783_v33, %v783_v33 }
 0x8ee   : > { %1031 = vmatmul.mubr.msk.bf16.vlgmr.msra.gmra.mrb[20].mxu1 %vm256_vm2, %v784_v34 }
 0x9c1   : > { %v827_v29 = vpop.f32.mrb[20].mxu1 }
 0x9c2   : > { %842 = vrot.lane.b32.xlu0 %v827_v29, %s1113_s3  ;;  %v1032_v35 = vpop.f32.mrb[21].mxu1 }
 0x9c3   : > { %v830_v36 = vpop.f32.mrb[22].mxu1 }
 0x9c4   : > { %v1033_v37 = vpop.f32.mrb[23].mxu1 }
 0xa34   : > { %v843_v42 = vpop.permute.xlu0 %842 }
 0xa35   : > { %v848_v43 = vsel %vm847_vm4, %v846_v41, %v843_v42 }
 0xa36   : > { %850 = vst.msk [vmem:[%s155_s6] sm:$0xff] %vm849_vm5, %v848_v43 }
 0xa37 PF: > { %s12_s9 = sadd.s32 1, %s1096_s9  }
 0xa38   : > { %p9_p4 = scmp.ge.s32.totalorder %s12_s9, 4  }
 0xa3a   :  { %11 = sbr.rel (!%p9_p4) target bundleno = 1 (0x1), region = 61 }

</bundles_post_ra>
